<compile_context>
chip_gen: v6e
topology: v6e:2x2x1
jax: 0.10.0
libtpu: 0.0.40
codegen_flags: <defaults>
</compile_context>

<pallas_src>
import functools

import jax
import jax.numpy as jnp
from jax.experimental import pallas as pl
from jax.experimental.pallas import tpu as pltpu


def _round_up(n, m):
    return ((n + m - 1) // m) * m


def _vae_kernel(x_ref, noise_ref,
                w1_ref, b1_ref, w2_ref, b2_ref,
                w3m_ref, b3m_ref, w3s_ref, b3s_ref,
                w4_ref, b4_ref, w5_ref, b5_ref, w6_ref, b6_ref,
                out_ref, kld_ref, *, batch, tile, denom):
    f32 = jnp.float32
    bf16 = jnp.bfloat16
    i = pl.program_id(0)

    # ---- KLD accumulator init (output block is resident across the grid) ---
    @pl.when(i == 0)
    def _init():
        kld_ref[...] = jnp.zeros_like(kld_ref)

    x = x_ref[...]

    # ---- encoder: 784 -> 256 -> 64 -> (10 | 10), ReLU after each -----------
    h = jnp.dot(x.astype(bf16), w1_ref[...], preferred_element_type=f32)
    h = jnp.maximum(h + b1_ref[...], 0.0)
    h = jnp.dot(h, w2_ref[...], preferred_element_type=f32)
    h = jnp.maximum(h + b2_ref[...], 0.0)
    # Split fc3 head: mu / sigma produced directly, no lane-offset slice.
    mu = jnp.maximum(
        jnp.dot(h, w3m_ref[...], preferred_element_type=f32) + b3m_ref[...], 0.0)
    sigma = jnp.maximum(
        jnp.dot(h, w3s_ref[...], preferred_element_type=f32) + b3s_ref[...], 0.0)

    # ---- reparameterization: h = mu + sigma * eps ---------------------------
    z = mu + sigma * noise_ref[...]

    # ---- KLD partial sum for this tile (mask out batch-padding rows) --------
    row = i * tile + jax.lax.broadcasted_iota(jnp.int32, (tile, 1), 0)
    valid = (row < batch).astype(f32)
    sig2 = sigma * sigma
    kld_elem = mu * mu + sig2 - jnp.log(1e-8 + sig2) - 1.0
    kld_ref[...] = kld_ref[...] + 0.5 * jnp.sum(kld_elem * valid)

    # ---- decoder: 10 -> 64 -> 256 -> 784, sigmoid output --------------------
    d = jnp.dot(z, w4_ref[...], preferred_element_type=f32)
    d = jnp.maximum(d + b4_ref[...], 0.0)
    d = jnp.dot(d, w5_ref[...], preferred_element_type=f32)
    d = jnp.maximum(d + b5_ref[...], 0.0)
    logits = jnp.dot(d.astype(bf16), w6_ref[...], preferred_element_type=f32)
    out_ref[...] = jax.nn.sigmoid(logits + b6_ref[...])

    # ---- finalize KLD: divide by np.prod(x.shape) == B * 784 ----------------
    @pl.when(i == pl.num_programs(0) - 1)
    def _finalize():
        kld_ref[...] = kld_ref[...] * (1.0 / denom)


def init_params(key):
    """PyTorch-default-style init: U(-1/sqrt(fan_in), 1/sqrt(fan_in)).

    Weights are stored transposed as (in_features, out_features) so the kernel
    computes y = x @ W + b (== PyTorch's x @ W.T + b). Biases are (1, out)."""
    dims = [(784, 256), (256, 64), (64, 20),      # encoder
            (10, 64), (64, 256), (256, 784)]      # decoder
    params = []
    for (fan_in, fan_out) in dims:
        key, kw, kb = jax.random.split(key, 3)
        bound = 1.0 / jnp.sqrt(jnp.float32(fan_in))
        w = jax.random.uniform(kw, (fan_in, fan_out), jnp.float32, -bound, bound)
        b = jax.random.uniform(kb, (1, fan_out), jnp.float32, -bound, bound)
        params.extend([w, b])
    return params


def vae_forward(x_nchw, params, noise):
    """x_nchw: (B, 1, 28, 28) float32 ; noise: (B, 10) float32 ~ N(0, 1)."""
    B = x_nchw.shape[0]
    x = x_nchw.reshape(B, 784).astype(jnp.float32)
    denom = float(B * 784)  # np.prod(x.shape) of the flattened (B, 784) tensor

    w1, b1, w2, b2, w3, b3, w4, b4, w5, b5, w6, b6 = params

    # bf16 weights for the two big matmuls (f32 accumulation on the MXU).
    w1 = w1.astype(jnp.bfloat16)
    w6 = w6.astype(jnp.bfloat16)
    # Split fc3 into mu / sigma heads (same semantics as chunk(2, dim=1)).
    w3m, w3s = w3[:, :10], w3[:, 10:]
    b3m, b3s = b3[:, :10], b3[:, 10:]
    weights = (w1, b1, w2, b2, w3m, b3m, w3s, b3s, w4, b4, w5, b5, w6, b6)

    # Batch tile: big enough for DMA/compute overlap, bounded VMEM at large B.
    TB = _round_up(B, 8) if B <= 1024 else 512
    B_pad = _round_up(B, TB)
    grid = (B_pad // TB,)
    if B_pad != B:
        x = jnp.pad(x, ((0, B_pad - B), (0, 0)))
        noise = jnp.pad(noise, ((0, B_pad - B), (0, 0)))

    kernel = functools.partial(_vae_kernel, batch=B, tile=TB, denom=denom)

    batched = lambda i: (i, 0)     # batch-tiled arrays
    resident = lambda i: (0, 0)    # weights/biases stay resident in VMEM

    in_specs = [
        pl.BlockSpec((TB, 784), batched),          # x
        pl.BlockSpec((TB, 10), batched),           # noise
    ] + [pl.BlockSpec(w.shape, resident) for w in weights]
    out_specs = [
        pl.BlockSpec((TB, 784), batched),          # reconstruction
        pl.BlockSpec((1, 1), resident),            # KLD accumulator
    ]

    flops = 2 * B_pad * (784 * 256 + 256 * 64 + 64 * 20
                         + 10 * 64 + 64 * 256 + 256 * 784)
    transcendentals = B_pad * (784 + 10)
    bytes_accessed = int((2 * B_pad * 784 + B_pad * 10) * 4
                         + sum(int(w.size) * w.dtype.itemsize for w in weights))

    out_flat, kld = pl.pallas_call(
        kernel,
        out_shape=(
            jax.ShapeDtypeStruct((B_pad, 784), jnp.float32),
            jax.ShapeDtypeStruct((1, 1), jnp.float32),
        ),
        grid_spec=pltpu.PrefetchScalarGridSpec(
            num_scalar_prefetch=0,
            grid=grid,
            in_specs=in_specs,
            out_specs=out_specs,
        ),
        compiler_params=pltpu.CompilerParams(
            # Revisited KLD output block => this axis must be "arbitrary";
            # "parallel" (megacore) would break the cross-step accumulation.
            dimension_semantics=("arbitrary",),
            vmem_limit_bytes=32 * 1024 * 1024,
        ),
        cost_estimate=pl.CostEstimate(
            flops=flops,
            transcendentals=transcendentals,
            bytes_accessed=bytes_accessed,
        ),
    )(x, noise, *weights)

    return out_flat[:B].reshape(B, 1, 28, 28), kld[0, 0]


if __name__ == "__main__":
    key = jax.random.PRNGKey(0)
    k_x, k_noise, k_params = jax.random.split(key, 3)

    B = 2
    x = jax.random.normal(k_x, (B, 1, 28, 28), dtype=jnp.float32)
    # Deterministic stand-in for torch.randn_like(sigma) in the reparam step.
    noise = jax.random.normal(k_noise, (B, 10), dtype=jnp.float32)
    params = init_params(k_params)

    recon, kld = jax.jit(vae_forward)(x, params, noise)
    jax.block_until_ready((recon, kld))

    assert recon.shape == (B, 1, 28, 28)
    assert recon.dtype == jnp.float32
    assert kld.shape == ()
    assert bool(jnp.isfinite(kld))
    print("KERNEL_OK")
</pallas_src>

<mosaic_0001>
module attributes {stable_mosaic.version = 11 : i64} {
  func.func @_vae_kernel(%arg0: i32, %arg1: memref<8x784xf32, #tpu.memory_space<vmem>>, %arg2: memref<8x10xf32, #tpu.memory_space<vmem>>, %arg3: memref<784x256xbf16, #tpu.memory_space<vmem>>, %arg4: memref<1x256xf32, #tpu.memory_space<vmem>>, %arg5: memref<256x64xf32, #tpu.memory_space<vmem>>, %arg6: memref<1x64xf32, #tpu.memory_space<vmem>>, %arg7: memref<64x10xf32, #tpu.memory_space<vmem>>, %arg8: memref<1x10xf32, #tpu.memory_space<vmem>>, %arg9: memref<64x10xf32, #tpu.memory_space<vmem>>, %arg10: memref<1x10xf32, #tpu.memory_space<vmem>>, %arg11: memref<10x64xf32, #tpu.memory_space<vmem>>, %arg12: memref<1x64xf32, #tpu.memory_space<vmem>>, %arg13: memref<64x256xf32, #tpu.memory_space<vmem>>, %arg14: memref<1x256xf32, #tpu.memory_space<vmem>>, %arg15: memref<256x784xbf16, #tpu.memory_space<vmem>>, %arg16: memref<1x784xf32, #tpu.memory_space<vmem>>, %arg17: memref<8x784xf32, #tpu.memory_space<vmem>>, %arg18: memref<1x1xf32, #tpu.memory_space<vmem>>) attributes {dimension_semantics = [#tpu.dimension_semantics<arbitrary>], iteration_bounds = array<i64: 1>, scalar_prefetch = 0 : i64, scratch_operands = 0 : i64, tpu.core_type = #tpu.core_type<tc>, window_params = [{transform_indices = @transform_0, window_bounds = array<i64: 8, 784>}, {transform_indices = @transform_1, window_bounds = array<i64: 8, 10>}, {pipeline_mode = #tpu.pipeline_mode<synchronous>, transform_indices = @transform_2, window_bounds = array<i64: 784, 256>}, {pipeline_mode = #tpu.pipeline_mode<synchronous>, transform_indices = @transform_3, window_bounds = array<i64: 1, 256>}, {pipeline_mode = #tpu.pipeline_mode<synchronous>, transform_indices = @transform_4, window_bounds = array<i64: 256, 64>}, {pipeline_mode = #tpu.pipeline_mode<synchronous>, transform_indices = @transform_5, window_bounds = array<i64: 1, 64>}, {pipeline_mode = #tpu.pipeline_mode<synchronous>, transform_indices = @transform_6, window_bounds = array<i64: 64, 10>}, {pipeline_mode = #tpu.pipeline_mode<synchronous>, transform_indices = @transform_7, window_bounds = array<i64: 1, 10>}, {pipeline_mode = #tpu.pipeline_mode<synchronous>, transform_indices = @transform_8, window_bounds = array<i64: 64, 10>}, {pipeline_mode = #tpu.pipeline_mode<synchronous>, transform_indices = @transform_9, window_bounds = array<i64: 1, 10>}, {pipeline_mode = #tpu.pipeline_mode<synchronous>, transform_indices = @transform_10, window_bounds = array<i64: 10, 64>}, {pipeline_mode = #tpu.pipeline_mode<synchronous>, transform_indices = @transform_11, window_bounds = array<i64: 1, 64>}, {pipeline_mode = #tpu.pipeline_mode<synchronous>, transform_indices = @transform_12, window_bounds = array<i64: 64, 256>}, {pipeline_mode = #tpu.pipeline_mode<synchronous>, transform_indices = @transform_13, window_bounds = array<i64: 1, 256>}, {pipeline_mode = #tpu.pipeline_mode<synchronous>, transform_indices = @transform_14, window_bounds = array<i64: 256, 784>}, {pipeline_mode = #tpu.pipeline_mode<synchronous>, transform_indices = @transform_15, window_bounds = array<i64: 1, 784>}, {transform_indices = @transform_16, window_bounds = array<i64: 8, 784>}, {pipeline_mode = #tpu.pipeline_mode<synchronous>, transform_indices = @transform_17, window_bounds = array<i64: 1, 1>}]} {
    %c0_i32 = arith.constant 0 : i32
    %0 = arith.cmpi eq, %arg0, %c0_i32 : i32
    %1 = arith.extui %0 : i1 to i32
    %c0_i32_0 = arith.constant 0 : i32
    %2 = arith.cmpi ne, %1, %c0_i32_0 : i32
    scf.if %2 {
      %cst_57 = arith.constant 0.000000e+00 : f32
      %93 = vector.broadcast %cst_57 : f32 to vector<1x1xf32>
      %c0_58 = arith.constant 0 : index
      %c0_59 = arith.constant 0 : index
      %94 = vector.load %arg18[%c0_58, %c0_59] : memref<1x1xf32, #tpu.memory_space<vmem>>, vector<1x1xf32>
      tpu.vector_store %arg18[%c0_58, %c0_59], %93 {strides = array<i32>} : memref<1x1xf32, #tpu.memory_space<vmem>>, vector<1x1xf32>,
    } else {
    }
    %c0 = arith.constant 0 : index
    %c0_1 = arith.constant 0 : index
    %3 = vector.load %arg1[%c0, %c0_1] : memref<8x784xf32, #tpu.memory_space<vmem>>, vector<8x784xf32>
    %4 = arith.truncf %3 : vector<8x784xf32> to vector<8x784xbf16>
    %c0_2 = arith.constant 0 : index
    %c0_3 = arith.constant 0 : index
    %5 = vector.load %arg3[%c0_2, %c0_3] : memref<784x256xbf16, #tpu.memory_space<vmem>>, vector<784x256xbf16>
    %cst = arith.constant dense<0.000000e+00> : vector<8x256xf32>
    %6 = tpu.matmul %4, %5, %cst {dimension_numbers = #tpu.dot_dimension_numbers<[1], [0], [0], [1], [0, 0, 1, 1], [], []>} : vector<8x784xbf16>, vector<784x256xbf16>, vector<8x256xf32> -> vector<8x256xf32>
    %c0_4 = arith.constant 0 : index
    %c0_5 = arith.constant 0 : index
    %7 = vector.load %arg4[%c0_4, %c0_5] : memref<1x256xf32, #tpu.memory_space<vmem>>, vector<1x256xf32>
    %8 = vector.broadcast %7 : vector<1x256xf32> to vector<8x256xf32>
    %9 = arith.addf %6, %8 : vector<8x256xf32>
    %cst_6 = arith.constant 0.000000e+00 : f32
    %10 = vector.broadcast %cst_6 : f32 to vector<8x256xf32>
    %11 = arith.maximumf %9, %10 : vector<8x256xf32>
    %c0_7 = arith.constant 0 : index
    %c0_8 = arith.constant 0 : index
    %12 = vector.load %arg5[%c0_7, %c0_8] : memref<256x64xf32, #tpu.memory_space<vmem>>, vector<256x64xf32>
    %cst_9 = arith.constant dense<0.000000e+00> : vector<8x64xf32>
    %13 = tpu.matmul %11, %12, %cst_9 {dimension_numbers = #tpu.dot_dimension_numbers<[1], [0], [0], [1], [0, 0, 1, 1], [], []>} : vector<8x256xf32>, vector<256x64xf32>, vector<8x64xf32> -> vector<8x64xf32>
    %c0_10 = arith.constant 0 : index
    %c0_11 = arith.constant 0 : index
    %14 = vector.load %arg6[%c0_10, %c0_11] : memref<1x64xf32, #tpu.memory_space<vmem>>, vector<1x64xf32>
    %15 = vector.broadcast %14 : vector<1x64xf32> to vector<8x64xf32>
    %16 = arith.addf %13, %15 : vector<8x64xf32>
    %cst_12 = arith.constant 0.000000e+00 : f32
    %17 = vector.broadcast %cst_12 : f32 to vector<8x64xf32>
    %18 = arith.maximumf %16, %17 : vector<8x64xf32>
    %c0_13 = arith.constant 0 : index
    %c0_14 = arith.constant 0 : index
    %19 = vector.load %arg7[%c0_13, %c0_14] : memref<64x10xf32, #tpu.memory_space<vmem>>, vector<64x10xf32>
    %cst_15 = arith.constant dense<0.000000e+00> : vector<8x10xf32>
    %20 = tpu.matmul %18, %19, %cst_15 {dimension_numbers = #tpu.dot_dimension_numbers<[1], [0], [0], [1], [0, 0, 1, 1], [], []>} : vector<8x64xf32>, vector<64x10xf32>, vector<8x10xf32> -> vector<8x10xf32>
    %c0_16 = arith.constant 0 : index
    %c0_17 = arith.constant 0 : index
    %21 = vector.load %arg8[%c0_16, %c0_17] : memref<1x10xf32, #tpu.memory_space<vmem>>, vector<1x10xf32>
    %22 = vector.broadcast %21 : vector<1x10xf32> to vector<8x10xf32>
    %23 = arith.addf %20, %22 : vector<8x10xf32>
    %cst_18 = arith.constant 0.000000e+00 : f32
    %24 = vector.broadcast %cst_18 : f32 to vector<8x10xf32>
    %25 = arith.maximumf %23, %24 : vector<8x10xf32>
    %c0_19 = arith.constant 0 : index
    %c0_20 = arith.constant 0 : index
    %26 = vector.load %arg9[%c0_19, %c0_20] : memref<64x10xf32, #tpu.memory_space<vmem>>, vector<64x10xf32>
    %cst_21 = arith.constant dense<0.000000e+00> : vector<8x10xf32>
    %27 = tpu.matmul %18, %26, %cst_21 {dimension_numbers = #tpu.dot_dimension_numbers<[1], [0], [0], [1], [0, 0, 1, 1], [], []>} : vector<8x64xf32>, vector<64x10xf32>, vector<8x10xf32> -> vector<8x10xf32>
    %c0_22 = arith.constant 0 : index
    %c0_23 = arith.constant 0 : index
    %28 = vector.load %arg10[%c0_22, %c0_23] : memref<1x10xf32, #tpu.memory_space<vmem>>, vector<1x10xf32>
    %29 = vector.broadcast %28 : vector<1x10xf32> to vector<8x10xf32>
    %30 = arith.addf %27, %29 : vector<8x10xf32>
    %cst_24 = arith.constant 0.000000e+00 : f32
    %31 = vector.broadcast %cst_24 : f32 to vector<8x10xf32>
    %32 = arith.maximumf %30, %31 : vector<8x10xf32>
    %c0_25 = arith.constant 0 : index
    %c0_26 = arith.constant 0 : index
    %33 = vector.load %arg2[%c0_25, %c0_26] : memref<8x10xf32, #tpu.memory_space<vmem>>, vector<8x10xf32>
    %34 = arith.mulf %32, %33 : vector<8x10xf32>
    %35 = arith.addf %25, %34 : vector<8x10xf32>
    %c8_i32 = arith.constant 8 : i32
    %36 = arith.muli %arg0, %c8_i32 : i32
    %37 = tpu.iota {dimensions = array<i32: 0>} : vector<8x1xi32>
    %38 = vector.broadcast %36 : i32 to vector<8x1xi32>
    %39 = arith.addi %38, %37 : vector<8x1xi32>
    %c2_i32 = arith.constant 2 : i32
    %40 = vector.broadcast %c2_i32 : i32 to vector<8x1xi32>
    %41 = arith.cmpi slt, %39, %40 : vector<8x1xi32>
    %42 = arith.extui %41 : vector<8x1xi1> to vector<8x1xi32>
    %43 = arith.sitofp %42 : vector<8x1xi32> to vector<8x1xf32>
    %44 = arith.mulf %32, %32 : vector<8x10xf32>
    %45 = arith.mulf %25, %25 : vector<8x10xf32>
    %46 = arith.addf %45, %44 : vector<8x10xf32>
    %cst_27 = arith.constant 9.99999993E-9 : f32
    %47 = vector.broadcast %cst_27 : f32 to vector<8x10xf32>
    %48 = arith.addf %47, %44 : vector<8x10xf32>
    %49 = math.log %48 : vector<8x10xf32>
    %50 = arith.subf %46, %49 : vector<8x10xf32>
    %cst_28 = arith.constant 1.000000e+00 : f32
    %51 = vector.broadcast %cst_28 : f32 to vector<8x10xf32>
    %52 = arith.subf %50, %51 : vector<8x10xf32>
    %c0_29 = arith.constant 0 : index
    %c0_30 = arith.constant 0 : index
    %53 = vector.load %arg18[%c0_29, %c0_30] : memref<1x1xf32, #tpu.memory_space<vmem>>, vector<1x1xf32>
    %54 = vector.broadcast %43 : vector<8x1xf32> to vector<8x10xf32>
    %55 = arith.mulf %52, %54 : vector<8x10xf32>
    %56 = vector.shape_cast %55 : vector<8x10xf32> to vector<1x8x10xf32>
    %cst_31 = arith.constant dense<0.000000e+00> : vector<1xf32>
    %57 = vector.multi_reduction <add>, %56, %cst_31 [1, 2] : vector<1x8x10xf32> to vector<1xf32>
    %58 = vector.shape_cast %57 : vector<1xf32> to vector<1x1x1xf32>
    %59 = vector.extract %58[0, 0, 0] : f32 from vector<1x1x1xf32>
    %cst_32 = arith.constant 5.000000e-01 : f32
    %60 = arith.mulf %cst_32, %59 : f32
    %61 = vector.broadcast %60 : f32 to vector<1x1xf32>
    %62 = arith.addf %53, %61 : vector<1x1xf32>
    %c0_33 = arith.constant 0 : index
    %c0_34 = arith.constant 0 : index
    %63 = vector.load %arg18[%c0_33, %c0_34] : memref<1x1xf32, #tpu.memory_space<vmem>>, vector<1x1xf32>
    tpu.vector_store %arg18[%c0_33, %c0_34], %62 {strides = array<i32>} : memref<1x1xf32, #tpu.memory_space<vmem>>, vector<1x1xf32>,
    %c0_35 = arith.constant 0 : index
    %c0_36 = arith.constant 0 : index
    %64 = vector.load %arg11[%c0_35, %c0_36] : memref<10x64xf32, #tpu.memory_space<vmem>>, vector<10x64xf32>
    %cst_37 = arith.constant dense<0.000000e+00> : vector<8x64xf32>
    %65 = tpu.matmul %35, %64, %cst_37 {dimension_numbers = #tpu.dot_dimension_numbers<[1], [0], [0], [1], [0, 0, 1, 1], [], []>} : vector<8x10xf32>, vector<10x64xf32>, vector<8x64xf32> -> vector<8x64xf32>
    %c0_38 = arith.constant 0 : index
    %c0_39 = arith.constant 0 : index
    %66 = vector.load %arg12[%c0_38, %c0_39] : memref<1x64xf32, #tpu.memory_space<vmem>>, vector<1x64xf32>
    %67 = vector.broadcast %66 : vector<1x64xf32> to vector<8x64xf32>
    %68 = arith.addf %65, %67 : vector<8x64xf32>
    %cst_40 = arith.constant 0.000000e+00 : f32
    %69 = vector.broadcast %cst_40 : f32 to vector<8x64xf32>
    %70 = arith.maximumf %68, %69 : vector<8x64xf32>
    %c0_41 = arith.constant 0 : index
    %c0_42 = arith.constant 0 : index
    %71 = vector.load %arg13[%c0_41, %c0_42] : memref<64x256xf32, #tpu.memory_space<vmem>>, vector<64x256xf32>
    %cst_43 = arith.constant dense<0.000000e+00> : vector<8x256xf32>
    %72 = tpu.matmul %70, %71, %cst_43 {dimension_numbers = #tpu.dot_dimension_numbers<[1], [0], [0], [1], [0, 0, 1, 1], [], []>} : vector<8x64xf32>, vector<64x256xf32>, vector<8x256xf32> -> vector<8x256xf32>
    %c0_44 = arith.constant 0 : index
    %c0_45 = arith.constant 0 : index
    %73 = vector.load %arg14[%c0_44, %c0_45] : memref<1x256xf32, #tpu.memory_space<vmem>>, vector<1x256xf32>
    %74 = vector.broadcast %73 : vector<1x256xf32> to vector<8x256xf32>
    %75 = arith.addf %72, %74 : vector<8x256xf32>
    %cst_46 = arith.constant 0.000000e+00 : f32
    %76 = vector.broadcast %cst_46 : f32 to vector<8x256xf32>
    %77 = arith.maximumf %75, %76 : vector<8x256xf32>
    %78 = arith.truncf %77 : vector<8x256xf32> to vector<8x256xbf16>
    %c0_47 = arith.constant 0 : index
    %c0_48 = arith.constant 0 : index
    %79 = vector.load %arg15[%c0_47, %c0_48] : memref<256x784xbf16, #tpu.memory_space<vmem>>, vector<256x784xbf16>
    %cst_49 = arith.constant dense<0.000000e+00> : vector<8x784xf32>
    %80 = tpu.matmul %78, %79, %cst_49 {dimension_numbers = #tpu.dot_dimension_numbers<[1], [0], [0], [1], [0, 0, 1, 1], [], []>} : vector<8x256xbf16>, vector<256x784xbf16>, vector<8x784xf32> -> vector<8x784xf32>
    %c0_50 = arith.constant 0 : index
    %c0_51 = arith.constant 0 : index
    %81 = vector.load %arg16[%c0_50, %c0_51] : memref<1x784xf32, #tpu.memory_space<vmem>>, vector<1x784xf32>
    %82 = vector.broadcast %81 : vector<1x784xf32> to vector<8x784xf32>
    %83 = arith.addf %80, %82 : vector<8x784xf32>
    %84 = arith.negf %83 : vector<8x784xf32>
    %85 = math.exp %84 : vector<8x784xf32>
    %cst_52 = arith.constant 1.000000e+00 : f32
    %86 = vector.broadcast %cst_52 : f32 to vector<8x784xf32>
    %87 = arith.addf %86, %85 : vector<8x784xf32>
    %88 = arith.divf %86, %87 : vector<8x784xf32>
    %c0_53 = arith.constant 0 : index
    %c0_54 = arith.constant 0 : index
    %89 = vector.load %arg17[%c0_53, %c0_54] : memref<8x784xf32, #tpu.memory_space<vmem>>, vector<8x784xf32>
    tpu.vector_store %arg17[%c0_53, %c0_54], %88 {strides = array<i32>} : memref<8x784xf32, #tpu.memory_space<vmem>>, vector<8x784xf32>,
    %c0_i32_55 = arith.constant 0 : i32
    %90 = arith.cmpi eq, %arg0, %c0_i32_55 : i32
    %91 = arith.extui %90 : i1 to i32
    %c0_i32_56 = arith.constant 0 : i32
    %92 = arith.cmpi ne, %91, %c0_i32_56 : i32
    scf.if %92 {
      %c0_57 = arith.constant 0 : index
      %c0_58 = arith.constant 0 : index
      %93 = vector.load %arg18[%c0_57, %c0_58] : memref<1x1xf32, #tpu.memory_space<vmem>>, vector<1x1xf32>
      %cst_59 = arith.constant 6.37755089E-4 : f32
      %94 = vector.broadcast %cst_59 : f32 to vector<1x1xf32>
      %95 = arith.mulf %93, %94 : vector<1x1xf32>
      %c0_60 = arith.constant 0 : index
      %c0_61 = arith.constant 0 : index
      %96 = vector.load %arg18[%c0_60, %c0_61] : memref<1x1xf32, #tpu.memory_space<vmem>>, vector<1x1xf32>
      tpu.vector_store %arg18[%c0_60, %c0_61], %95 {strides = array<i32>} : memref<1x1xf32, #tpu.memory_space<vmem>>, vector<1x1xf32>,
    } else {
    }
    return
  }
  func.func @transform_0(%arg0: i32) -> (i32, i32) {
    %c0_i32 = arith.constant 0 : i32
    %c0_i32_0 = arith.constant 0 : i32
    return %arg0, %c0_i32 : i32, i32
  }
  func.func @transform_1(%arg0: i32) -> (i32, i32) {
    %c0_i32 = arith.constant 0 : i32
    %c0_i32_0 = arith.constant 0 : i32
    return %arg0, %c0_i32 : i32, i32
  }
  func.func @transform_2(%arg0: i32) -> (i32, i32) {
    %c0_i32 = arith.constant 0 : i32
    %c0_i32_0 = arith.constant 0 : i32
    %c0_i32_1 = arith.constant 0 : i32
    return %c0_i32, %c0_i32_0 : i32, i32
  }
  func.func @transform_3(%arg0: i32) -> (i32, i32) {
    %c0_i32 = arith.constant 0 : i32
    %c0_i32_0 = arith.constant 0 : i32
    %c0_i32_1 = arith.constant 0 : i32
    return %c0_i32, %c0_i32_0 : i32, i32
  }
  func.func @transform_4(%arg0: i32) -> (i32, i32) {
    %c0_i32 = arith.constant 0 : i32
    %c0_i32_0 = arith.constant 0 : i32
    %c0_i32_1 = arith.constant 0 : i32
    return %c0_i32, %c0_i32_0 : i32, i32
  }
  func.func @transform_5(%arg0: i32) -> (i32, i32) {
    %c0_i32 = arith.constant 0 : i32
    %c0_i32_0 = arith.constant 0 : i32
    %c0_i32_1 = arith.constant 0 : i32
    return %c0_i32, %c0_i32_0 : i32, i32
  }
  func.func @transform_6(%arg0: i32) -> (i32, i32) {
    %c0_i32 = arith.constant 0 : i32
    %c0_i32_0 = arith.constant 0 : i32
    %c0_i32_1 = arith.constant 0 : i32
    return %c0_i32, %c0_i32_0 : i32, i32
  }
  func.func @transform_7(%arg0: i32) -> (i32, i32) {
    %c0_i32 = arith.constant 0 : i32
    %c0_i32_0 = arith.constant 0 : i32
    %c0_i32_1 = arith.constant 0 : i32
    return %c0_i32, %c0_i32_0 : i32, i32
  }
  func.func @transform_8(%arg0: i32) -> (i32, i32) {
    %c0_i32 = arith.constant 0 : i32
    %c0_i32_0 = arith.constant 0 : i32
    %c0_i32_1 = arith.constant 0 : i32
    return %c0_i32, %c0_i32_0 : i32, i32
  }
  func.func @transform_9(%arg0: i32) -> (i32, i32) {
    %c0_i32 = arith.constant 0 : i32
    %c0_i32_0 = arith.constant 0 : i32
    %c0_i32_1 = arith.constant 0 : i32
    return %c0_i32, %c0_i32_0 : i32, i32
  }
  func.func @transform_10(%arg0: i32) -> (i32, i32) {
    %c0_i32 = arith.constant 0 : i32
    %c0_i32_0 = arith.constant 0 : i32
    %c0_i32_1 = arith.constant 0 : i32
    return %c0_i32, %c0_i32_0 : i32, i32
  }
  func.func @transform_11(%arg0: i32) -> (i32, i32) {
    %c0_i32 = arith.constant 0 : i32
    %c0_i32_0 = arith.constant 0 : i32
    %c0_i32_1 = arith.constant 0 : i32
    return %c0_i32, %c0_i32_0 : i32, i32
  }
  func.func @transform_12(%arg0: i32) -> (i32, i32) {
    %c0_i32 = arith.constant 0 : i32
    %c0_i32_0 = arith.constant 0 : i32
    %c0_i32_1 = arith.constant 0 : i32
    return %c0_i32, %c0_i32_0 : i32, i32
  }
  func.func @transform_13(%arg0: i32) -> (i32, i32) {
    %c0_i32 = arith.constant 0 : i32
    %c0_i32_0 = arith.constant 0 : i32
    %c0_i32_1 = arith.constant 0 : i32
    return %c0_i32, %c0_i32_0 : i32, i32
  }
  func.func @transform_14(%arg0: i32) -> (i32, i32) {
    %c0_i32 = arith.constant 0 : i32
    %c0_i32_0 = arith.constant 0 : i32
    %c0_i32_1 = arith.constant 0 : i32
    return %c0_i32, %c0_i32_0 : i32, i32
  }
  func.func @transform_15(%arg0: i32) -> (i32, i32) {
    %c0_i32 = arith.constant 0 : i32
    %c0_i32_0 = arith.constant 0 : i32
    %c0_i32_1 = arith.constant 0 : i32
    return %c0_i32, %c0_i32_0 : i32, i32
  }
  func.func @transform_16(%arg0: i32) -> (i32, i32) {
    %c0_i32 = arith.constant 0 : i32
    %c0_i32_0 = arith.constant 0 : i32
    return %arg0, %c0_i32 : i32, i32
  }
  func.func @transform_17(%arg0: i32) -> (i32, i32) {
    %c0_i32 = arith.constant 0 : i32
    %c0_i32_0 = arith.constant 0 : i32
    %c0_i32_1 = arith.constant 0 : i32
    return %c0_i32, %c0_i32_0 : i32, i32
  }
}

</mosaic_0001>

<bundles_post_ra>
// kernel: vae_forward.1
= control target key start
LH: loop header
LB: loop body
LE: loop exit
PB: predicated region body
PF: predicated region fallthrough
CT: control target
= control target key end

     0   :  { %s4106_s0 = inlined_call_operand.vmem [shape: f32[8,784], index: 0, kind: input, shape index: {}]   ;;  %s4107_s1 = inlined_call_operand.vmem [shape: f32[8,10], index: 1, kind: input, shape index: {}]   ;;  %s4108_s2 = inlined_call_operand.vmem [shape: bf16[784,256], index: 2, kind: input, shape index: {}]   ;;  %s4109_s3 = inlined_call_operand.vmem [shape: f32[1,256], index: 3, kind: input, shape index: {}]   ;;  %s4110_s4 = inlined_call_operand.vmem [shape: f32[256,64], index: 4, kind: input, shape index: {}]   ;;  %s4111_s5 = inlined_call_operand.vmem [shape: f32[1,64], index: 5, kind: input, shape index: {}]   ;;  %s4112_s6 = inlined_call_operand.vmem [shape: f32[64,10], index: 6, kind: input, shape index: {}]   ;;  %s4113_s7 = inlined_call_operand.vmem [shape: f32[1,10], index: 7, kind: input, shape index: {}]   ;;  %s4114_s8 = inlined_call_operand.vmem [shape: f32[64,10], index: 8, kind: input, shape index: {}]   ;;  %s4115_s9 = inlined_call_operand.vmem [shape: f32[1,10], index: 9, kind: input, shape index: {}]   ;;  %s4116_s10 = inlined_call_operand.vmem [shape: f32[10,64], index: 10, kind: input, shape index: {}]   ;;  %s4117_s11 = inlined_call_operand.vmem [shape: f32[1,64], index: 11, kind: input, shape index: {}]   ;;  %s4118_s12 = inlined_call_operand.vmem [shape: f32[64,256], index: 12, kind: input, shape index: {}]   ;;  %s4119_s13 = inlined_call_operand.vmem [shape: f32[1,256], index: 13, kind: input, shape index: {}]   ;;  %s4120_s14 = inlined_call_operand.vmem [shape: bf16[256,784], index: 14, kind: input, shape index: {}]   ;;  %s4121_s15 = inlined_call_operand.vmem [shape: f32[1,784], index: 15, kind: input, shape index: {}]   ;;  %s4122_s16 = inlined_call_operand.vmem [shape: f32[8,784], index: 16, kind: output, shape index: {0}]   ;;  %s4123_s17 = inlined_call_operand.hbm [shape: f32[1,1], index: 17, kind: output, shape index: {1}]  }
   0x1   :  { %4125 = sst [smem:[#allocation5_spill]] %s4106_s0 }
   0x2   :  { %4126 = sst [smem:[#allocation6_spill]] %s4107_s1 }
   0x3   :  { %v2698_v0 = vld [vmem:[%s4108_s2 + $0x74] ss:$8 sps:$4 sm:$0xff]   ;;  %v2700_v1 = vld [vmem:[%s4108_s2 + $0x70] ss:$8 sps:$4 sm:$0xff]   ;;  %v2704_v4 = vld [vmem:[%s4108_s2 + $0x64] ss:$8 sps:$4 sm:$0xff]  }
   0x4   :  { %681 = vmatprep.subr.bf16.mxu0 %v2698_v0  ;;  %v2701_v2 = vld [vmem:[%s4108_s2 + $0x174] ss:$8 sps:$4 sm:$0xff]   ;;  %v2703_v3 = vld [vmem:[%s4108_s2 + $0x170] ss:$8 sps:$4 sm:$0xff]   ;;  %v2706_v5 = vld [vmem:[%s4108_s2 + $0x60] ss:$8 sps:$4 sm:$0xff]  }
   0x5   :  { %682 = vmatpush1.bf16.msra.mxu0 %v2700_v1  ;;  %722 = vmatprep.subr.bf16.mxu1 %v2701_v2  ;;  %v2707_v6 = vld [vmem:[%s4108_s2 + $0x164] ss:$8 sps:$4 sm:$0xff]   ;;  %v2709_v7 = vld [vmem:[%s4108_s2 + $0x160] ss:$8 sps:$4 sm:$0xff]   ;;  %v2710_v8 = vld [vmem:[%s4108_s2 + $0x54] ss:$8 sps:$4 sm:$0xff]  }
   0x6   :  { %723 = vmatpush1.bf16.msra.mxu1 %v2703_v3  ;;  %683 = vmatprep.subr.bf16.mxu0 %v2704_v4  ;;  %v2712_v9 = vld [vmem:[%s4108_s2 + $0x50] ss:$8 sps:$4 sm:$0xff]   ;;  %v2713_v10 = vld [vmem:[%s4108_s2 + $0x154] ss:$8 sps:$4 sm:$0xff]   ;;  %v2716_v11 = vld [vmem:[%s4108_s2 + $0x44] ss:$8 sps:$4 sm:$0xff]  }
   0x7   :  { %724 = vmatprep.subr.bf16.mxu1 %v2707_v6  ;;  %v2715_v12 = vld [vmem:[%s4108_s2 + $0x150] ss:$8 sps:$4 sm:$0xff]   ;;  %v2719_v13 = vld [vmem:[%s4108_s2 + $0x144] ss:$8 sps:$4 sm:$0xff]   ;;  %v2718_v14 = vld [vmem:[%s4108_s2 + $0x40] ss:$8 sps:$4 sm:$0xff]  }
   0x8   :  { %v2722_v15 = vld [vmem:[%s4108_s2 + $0x34] ss:$8 sps:$4 sm:$0xff]   ;;  %v2721_v16 = vld [vmem:[%s4108_s2 + $0x140] ss:$8 sps:$4 sm:$0xff]   ;;  %v2724_v18 = vld [vmem:[%s4108_s2 + $0x30] ss:$8 sps:$4 sm:$0xff]  }
   0x9   :  { %684 = vmatpush1.bf16.msra.mxu0 %v2706_v5  ;;  %v2725_v17 = vld [vmem:[%s4108_s2 + $0x134] ss:$8 sps:$4 sm:$0xff]   ;;  %v2728_v19 = vld [vmem:[%s4108_s2 + $0x24] ss:$8 sps:$4 sm:$0xff]   ;;  %v2727_v20 = vld [vmem:[%s4108_s2 + $0x130] ss:$8 sps:$4 sm:$0xff]  }
   0xa   :  { %685 = vmatprep.subr.bf16.mxu0 %v2710_v8  ;;  %725 = vmatpush1.bf16.msra.mxu1 %v2709_v7  ;;  %v2731_v21 = vld [vmem:[%s4108_s2 + $0x124] ss:$8 sps:$4 sm:$0xff]   ;;  %v2730_v22 = vld [vmem:[%s4108_s2 + $0x20] ss:$8 sps:$4 sm:$0xff]   ;;  %v2734_v23 = vld [vmem:[%s4108_s2 + $0x14] ss:$8 sps:$4 sm:$0xff]  }
   0xb   :  { %726 = vmatprep.subr.bf16.mxu1 %v2713_v10  ;;  %v2733_v24 = vld [vmem:[%s4108_s2 + $0x120] ss:$8 sps:$4 sm:$0xff]   ;;  %v2737_v25 = vld [vmem:[%s4108_s2 + $0x114] ss:$8 sps:$4 sm:$0xff]   ;;  %v2736_v26 = vld [vmem:[%s4108_s2 + $0x10] ss:$8 sps:$4 sm:$0xff]  }
   0xc   :  { %v2740_v27 = vld [vmem:[%s4108_s2 + $0x4] ss:$8 sps:$4 sm:$0xff]   ;;  %v2739_v28 = vld [vmem:[%s4108_s2 + $0x110] ss:$8 sps:$4 sm:$0xff]   ;;  %v2742_v30 = vld [vmem:[%s4108_s2] ss:$8 sps:$4 sm:$0xff]  }
   0xd   :  { %686 = vmatpush1.bf16.msra.mxu0 %v2712_v9  ;;  %v2743_v29 = vld [vmem:[%s4108_s2 + $0x104] ss:$8 sps:$4 sm:$0xff]   ;;  %v2746_v31 = vld [vmem:[%s4108_s2 + $0xf4] ss:$8 sps:$4 sm:$0xff]   ;;  %v2745_v32 = vld [vmem:[%s4108_s2 + $0x100] ss:$8 sps:$4 sm:$0xff]  }
   0xe   :  { %687 = vmatprep.subr.bf16.mxu0 %v2716_v11  ;;  %727 = vmatpush1.bf16.msra.mxu1 %v2715_v12  ;;  %v2749_v33 = vld [vmem:[%s4108_s2 + $0x1f4] ss:$8 sps:$4 sm:$0xff]   ;;  %v2748_v34 = vld [vmem:[%s4108_s2 + $0xf0] ss:$8 sps:$4 sm:$0xff]   ;;  %v2752_v35 = vld [vmem:[%s4108_s2 + $0xe4] ss:$8 sps:$4 sm:$0xff]  }
   0xf   :  { %728 = vmatprep.subr.bf16.mxu1 %v2719_v13  ;;  %v2751_v36 = vld [vmem:[%s4108_s2 + $0x1f0] ss:$8 sps:$4 sm:$0xff]   ;;  %v2755_v37 = vld [vmem:[%s4108_s2 + $0x1e4] ss:$8 sps:$4 sm:$0xff]   ;;  %v2754_v38 = vld [vmem:[%s4108_s2 + $0xe0] ss:$8 sps:$4 sm:$0xff]  }
  0x10   :  { %v2758_v39 = vld [vmem:[%s4108_s2 + $0xd4] ss:$8 sps:$4 sm:$0xff]   ;;  %v2757_v40 = vld [vmem:[%s4108_s2 + $0x1e0] ss:$8 sps:$4 sm:$0xff]   ;;  %v2760_v42 = vld [vmem:[%s4108_s2 + $0xd0] ss:$8 sps:$4 sm:$0xff]  }
  0x11   :  { %688 = vmatpush1.bf16.msra.mxu0 %v2718_v14  ;;  %v2761_v41 = vld [vmem:[%s4108_s2 + $0x1d4] ss:$8 sps:$4 sm:$0xff]   ;;  %v2764_v43 = vld [vmem:[%s4108_s2 + $0xc4] ss:$8 sps:$4 sm:$0xff]   ;;  %v2763_v44 = vld [vmem:[%s4108_s2 + $0x1d0] ss:$8 sps:$4 sm:$0xff]  }
  0x12   :  { %689 = vmatprep.subr.bf16.mxu0 %v2722_v15  ;;  %729 = vmatpush1.bf16.msra.mxu1 %v2721_v16  ;;  %v2767_v45 = vld [vmem:[%s4108_s2 + $0x1c4] ss:$8 sps:$4 sm:$0xff]   ;;  %s4127_s28 = sld [smem:[#allocation5_spill]]  ;;  %v2766_v47 = vld [vmem:[%s4108_s2 + $0xc0] ss:$8 sps:$4 sm:$0xff]  }
  0x13   :  { %730 = vmatprep.subr.bf16.mxu1 %v2725_v17  ;;  %v2770_v49 = vld [vmem:[%s4108_s2 + $0xb4] ss:$8 sps:$4 sm:$0xff]   ;;  %v2769_v51 = vld [vmem:[%s4108_s2 + $0x1c0] ss:$8 sps:$4 sm:$0xff]   ;;  %v2772_v54 = vld [vmem:[%s4108_s2 + $0xb0] ss:$8 sps:$4 sm:$0xff]  }
  0x14   :  { %v2773_v53 = vld [vmem:[%s4108_s2 + $0x1b4] ss:$8 sps:$4 sm:$0xff]   ;;  %v2776_v55 = vld [vmem:[%s4108_s2 + $0xa4] ss:$8 sps:$4 sm:$0xff]   ;;  %v2775_v56 = vld [vmem:[%s4108_s2 + $0x1b0] ss:$8 sps:$4 sm:$0xff]  }
  0x15   :  { %690 = vmatpush1.bf16.msra.mxu0 %v2724_v18  ;;  %v2779_v57 = vld [vmem:[%s4108_s2 + $0x1a4] ss:$8 sps:$4 sm:$0xff]   ;;  %v2778_v58 = vld [vmem:[%s4108_s2 + $0xa0] ss:$8 sps:$4 sm:$0xff]   ;;  %v2782_v59 = vld [vmem:[%s4108_s2 + $0x94] ss:$8 sps:$4 sm:$0xff]  }
  0x16   :  { %691 = vmatprep.subr.bf16.mxu0 %v2728_v19  ;;  %731 = vmatpush1.bf16.msra.mxu1 %v2727_v20  ;;  %v2781_v60 = vld [vmem:[%s4108_s2 + $0x1a0] ss:$8 sps:$4 sm:$0xff]   ;;  %v2785_v61 = vld [vmem:[%s4108_s2 + $0x194] ss:$8 sps:$4 sm:$0xff]   ;;  %v2784_v62 = vld [vmem:[%s4108_s2 + $0x90] ss:$8 sps:$4 sm:$0xff]  }
  0x17   :  { %732 = vmatprep.subr.bf16.mxu1 %v2731_v21  ;;  %v2788_v63 = vld [vmem:[%s4108_s2 + $0x84] ss:$8 sps:$4 sm:$0xff]   ;;  %v2787_v0 = vld [vmem:[%s4108_s2 + $0x190] ss:$8 sps:$4 sm:$0xff]   ;;  %v2790_v1 = vld [vmem:[%s4108_s2 + $0x80] ss:$8 sps:$4 sm:$0xff]  }
  0x18   :  { %v64_v46 = vld [vmem:[%s4127_s28 + $0x8] sm:$0xff]  ;;  %v66_v50 = vld [vmem:[%s4127_s28 + $0x18] sm:$0xff]  ;;  %v63_v4 = vld [vmem:[%s4127_s28] sm:$0xff] }
  0x19   :  { %692 = vmatpush1.bf16.msra.mxu0 %v2730_v22  ;;  %v71_v48 = vpack.c.bf16 %v64_v46, %v64_v46  ;;  %v73_v52 = vpack.c.bf16 %v66_v50, %v66_v50  ;;  %v2791_v2 = vld [vmem:[%s4108_s2 + $0x184] ss:$8 sps:$4 sm:$0xff]   ;;  %v2793_v3 = vld [vmem:[%s4108_s2 + $0x180] ss:$8 sps:$4 sm:$0xff]   ;;  %v2796_v5 = vld [vmem:[%s4108_s2 + $0x274] ss:$8 sps:$4 sm:$0xff]   ;;  %v70_v7 = vpack.c.bf16 %v63_v4, %v63_v4 }
  0x1a   :  { %693 = vmatprep.subr.bf16.mxu0 %v2734_v23  ;;  %733 = vmatpush1.bf16.msra.mxu1 %v2733_v24  ;;  %v65_v6 = vld [vmem:[%s4127_s28 + $0x10] sm:$0xff]  ;;  %v2799_v10 = vld [vmem:[%s4108_s2 + $0x264] ss:$8 sps:$4 sm:$0xff]   ;;  %v2797_v13 = vld [vmem:[%s4108_s2 + $0x260] ss:$8 sps:$4 sm:$0xff]  }
  0x1b   :  { %734 = vmatprep.subr.bf16.mxu1 %v2737_v25  ;;  %713 = vmatprep.mubr.bf16.mxu0 %v71_v48  ;;  %v2794_v8 = vld [vmem:[%s4108_s2 + $0x270] ss:$8 sps:$4 sm:$0xff]   ;;  %v72_v9 = vpack.c.bf16 %v65_v6, %v65_v6  ;;  %v68_v11 = vld [vmem:[%s4127_s28 + $0x28] sm:$0xff]  ;;  %v2802_v14 = vld [vmem:[%s4108_s2 + $0x254] ss:$8 sps:$4 sm:$0xff]  }
  0x1c   :  { %754 = vmatprep.mubr.bf16.mxu1 %v73_v52  ;;  %v75_v12 = vpack.c.bf16 %v68_v11, %v68_v11  ;;  %v2800_v15 = vld [vmem:[%s4108_s2 + $0x250] ss:$8 sps:$4 sm:$0xff]   ;;  %v2805_v16 = vld [vmem:[%s4108_s2 + $0x244] ss:$8 sps:$4 sm:$0xff]   ;;  %v2803_v17 = vld [vmem:[%s4108_s2 + $0x240] ss:$8 sps:$4 sm:$0xff]  }
  0x1d   :  { %694 = vmatpush1.bf16.msra.mxu0 %v2736_v26  ;;  %v2808_v18 = vld [vmem:[%s4108_s2 + $0x234] ss:$8 sps:$4 sm:$0xff]   ;;  %v2806_v19 = vld [vmem:[%s4108_s2 + $0x230] ss:$8 sps:$4 sm:$0xff]   ;;  %v2811_v20 = vld [vmem:[%s4108_s2 + $0x224] ss:$8 sps:$4 sm:$0xff]  }
  0x1e   :  { %695 = vmatprep.subr.bf16.mxu0 %v2740_v27  ;;  %735 = vmatpush1.bf16.msra.mxu1 %v2739_v28  ;;  %v2809_v21 = vld [vmem:[%s4108_s2 + $0x220] ss:$8 sps:$4 sm:$0xff]   ;;  %v2814_v22 = vld [vmem:[%s4108_s2 + $0x214] ss:$8 sps:$4 sm:$0xff]   ;;  %v2812_v23 = vld [vmem:[%s4108_s2 + $0x210] ss:$8 sps:$4 sm:$0xff]  }
  0x1f   :  { %736 = vmatprep.subr.bf16.mxu1 %v2743_v29  ;;  %v2817_v24 = vld [vmem:[%s4108_s2 + $0x204] ss:$8 sps:$4 sm:$0xff]   ;;  %v2815_v25 = vld [vmem:[%s4108_s2 + $0x200] ss:$8 sps:$4 sm:$0xff]   ;;  %v2820_v26 = vld [vmem:[%s4108_s2 + $0x2f4] ss:$8 sps:$4 sm:$0xff]  }
  0x20   :  { %v2818_v27 = vld [vmem:[%s4108_s2 + $0x2f0] ss:$8 sps:$4 sm:$0xff]   ;;  %v2823_v28 = vld [vmem:[%s4108_s2 + $0x2e4] ss:$8 sps:$4 sm:$0xff]   ;;  %v2821_v29 = vld [vmem:[%s4108_s2 + $0x2e0] ss:$8 sps:$4 sm:$0xff]  }
  0x21   :  { %696 = vmatpush1.bf16.msra.mxu0 %v2742_v30  ;;  %v2826_v30 = vld [vmem:[%s4108_s2 + $0x2d4] ss:$8 sps:$4 sm:$0xff]  }
  0x22   :  { %697 = vmatprep.subr.bf16.mxu0 %v2746_v31  ;;  %737 = vmatpush1.bf16.msra.mxu1 %v2745_v32  ;;  %v2824_v31 = vld [vmem:[%s4108_s2 + $0x2d0] ss:$8 sps:$4 sm:$0xff]   ;;  %v2829_v32 = vld [vmem:[%s4108_s2 + $0x2c4] ss:$8 sps:$4 sm:$0xff]  }
  0x23   :  { %738 = vmatprep.subr.bf16.mxu1 %v2749_v33  ;;  %v2827_v33 = vld [vmem:[%s4108_s2 + $0x2c0] ss:$8 sps:$4 sm:$0xff]  }
  0x25   :  { %698 = vmatpush2.bf16.msra.mxu0 %v2748_v34  ;;  %v2832_v34 = vld [vmem:[%s4108_s2 + $0x2b4] ss:$8 sps:$4 sm:$0xff]  }
  0x26   :  { %699 = vmatprep.subr.bf16.mxu0 %v2752_v35  ;;  %739 = vmatpush2.bf16.msra.mxu1 %v2751_v36 }
  0x27   :  { %740 = vmatprep.subr.bf16.mxu1 %v2755_v37 }
  0x29   :  { %700 = vmatpush2.bf16.msra.mxu0 %v2754_v38 }
  0x2a   :  { %701 = vmatprep.subr.bf16.mxu0 %v2758_v39  ;;  %741 = vmatpush2.bf16.msra.mxu1 %v2757_v40 }
  0x2b   :  { %742 = vmatprep.subr.bf16.mxu1 %v2761_v41 }
  0x2d   :  { %702 = vmatpush2.bf16.msra.mxu0 %v2760_v42 }
  0x2e   :  { %703 = vmatprep.subr.bf16.mxu0 %v2764_v43  ;;  %743 = vmatpush2.bf16.msra.mxu1 %v2763_v44 }
  0x2f   :  { %744 = vmatprep.subr.bf16.mxu1 %v2767_v45 }
  0x31   :  { %704 = vmatpush2.bf16.msra.mxu0 %v2766_v47 }
  0x32   :  { %705 = vmatprep.subr.bf16.mxu0 %v2770_v49  ;;  %745 = vmatpush2.bf16.msra.mxu1 %v2769_v51 }
  0x33   :  { %746 = vmatprep.subr.bf16.mxu1 %v2773_v53 }
  0x35   :  { %706 = vmatpush2.bf16.msra.mxu0 %v2772_v54 }
  0x36   :  { %707 = vmatprep.subr.bf16.mxu0 %v2776_v55  ;;  %747 = vmatpush2.bf16.msra.mxu1 %v2775_v56 }
  0x37   :  { %748 = vmatprep.subr.bf16.mxu1 %v2779_v57 }
  0x39   :  { %708 = vmatpush2.bf16.msra.mxu0 %v2778_v58 }
  0x3a   :  { %709 = vmatprep.subr.bf16.mxu0 %v2782_v59  ;;  %749 = vmatpush2.bf16.msra.mxu1 %v2781_v60 }
  0x3b   :  { %750 = vmatprep.subr.bf16.mxu1 %v2785_v61 }
  0x3d   :  { %710 = vmatpush2.bf16.msra.mxu0 %v2784_v62 }
  0x3e   :  { %711 = vmatprep.subr.bf16.mxu0 %v2788_v63  ;;  %751 = vmatpush2.bf16.msra.mxu1 %v2787_v0 }
  0x3f   :  { %752 = vmatprep.subr.bf16.mxu1 %v2791_v2 }
  0x41   :  { %712 = vmatpush2.bf16.msra.mxu0 %v2790_v1 }
  0x42   :  { %763 = vmatprep.subr.bf16.mxu0 %v2796_v5  ;;  %753 = vmatpush2.bf16.msra.mxu1 %v2793_v3 }
  0x44   :  { %714 = vmatmul.mubr.bf16.vlgmr.msra.gmra.mxu0 %v70_v7 }
  0x45   :  { %764 = vmatpush1.bf16.msra.mxu0 %v2794_v8  ;;  %755 = vmatmul.mubr.bf16.vlgmr.msra.gmra.mxu1 %v72_v9 }
  0x46   :  { %765 = vmatprep.subr.bf16.mxu0 %v2799_v10  ;;  %795 = vmatprep.mubr.bf16.mxu0 %v75_v12 }
  0x49   :  { %766 = vmatpush1.bf16.msra.mxu0 %v2797_v13 }
  0x4a   :  { %767 = vmatprep.subr.bf16.mxu0 %v2802_v14 }
  0x4d   :  { %768 = vmatpush1.bf16.msra.mxu0 %v2800_v15 }
  0x4e   :  { %769 = vmatprep.subr.bf16.mxu0 %v2805_v16 }
  0x51   :  { %770 = vmatpush1.bf16.msra.mxu0 %v2803_v17 }
  0x52   :  { %771 = vmatprep.subr.bf16.mxu0 %v2808_v18 }
  0x55   :  { %772 = vmatpush1.bf16.msra.mxu0 %v2806_v19 }
  0x56   :  { %773 = vmatprep.subr.bf16.mxu0 %v2811_v20 }
  0x59   :  { %774 = vmatpush1.bf16.msra.mxu0 %v2809_v21 }
  0x5a   :  { %775 = vmatprep.subr.bf16.mxu0 %v2814_v22 }
  0x5d   :  { %776 = vmatpush1.bf16.msra.mxu0 %v2812_v23 }
  0x5e   :  { %777 = vmatprep.subr.bf16.mxu0 %v2817_v24 }
  0x61   :  { %778 = vmatpush1.bf16.msra.mxu0 %v2815_v25 }
  0x62   :  { %779 = vmatprep.subr.bf16.mxu0 %v2820_v26 }
  0x65   :  { %780 = vmatpush2.bf16.msra.mxu0 %v2818_v27 }
  0x66   :  { %781 = vmatprep.subr.bf16.mxu0 %v2823_v28 }
  0x69   :  { %782 = vmatpush2.bf16.msra.mxu0 %v2821_v29 }
  0x6a   :  { %783 = vmatprep.subr.bf16.mxu0 %v2826_v30 }
  0x6d   :  { %784 = vmatpush2.bf16.msra.mxu0 %v2824_v31 }
  0x6e   :  { %785 = vmatprep.subr.bf16.mxu0 %v2829_v32 }
  0x6f   :  { %23 = vsyncpa [#allocation3], 0  ;;  %v2830_v35 = vld [vmem:[%s4108_s2 + $0x2b0] ss:$8 sps:$4 sm:$0xff]   ;;  %v2835_v36 = vld [vmem:[%s4108_s2 + $0x2a4] ss:$8 sps:$4 sm:$0xff]   ;;  %v177_v18 = vlaneseq }
  0x70   :  { %v2833_v37 = vld [vmem:[%s4108_s2 + $0x2a0] ss:$8 sps:$4 sm:$0xff]   ;;  %v2838_v38 = vld [vmem:[%s4108_s2 + $0x294] ss:$8 sps:$4 sm:$0xff]   ;;  %v2836_v39 = vld [vmem:[%s4108_s2 + $0x290] ss:$8 sps:$4 sm:$0xff]  }
  0x71   :  { %786 = vmatpush2.bf16.msra.mxu0 %v2827_v33  ;;  %v2841_v40 = vld [vmem:[%s4108_s2 + $0x284] ss:$8 sps:$4 sm:$0xff]   ;;  %v2839_v41 = vld [vmem:[%s4108_s2 + $0x280] ss:$8 sps:$4 sm:$0xff]   ;;  %v3057_v46 = vmov 0   ;;  %v69_v47 = vld [vmem:[%s4127_s28 + $0x30] sm:$0xff] }
  0x72   :  { %787 = vmatprep.subr.bf16.mxu0 %v2832_v34  ;;  %v67_v42 = vld [vmem:[%s4127_s28 + $0x20] sm:$0xff]  ;;  %v76_v48 = vpack.c.bf16 %v69_v47, %v69_v47  ;;  %vm677_vm0 = vcmask 130048   ;;  %v878_v49 = vld [vmem:[%s4110_s4 + $0xf8] sm:$0xff]  ;;  %v877_v51 = vld [vmem:[%s4110_s4 + $0xf0] sm:$0xff]  ;;  %v3058_v17 = vmov 0.0   ;;  %v3565_v19 = vshrl.u32 %v177_v18, 7 }
  0x73   :  { %v2844_v43 = vld [vmem:[%s4108_s2 + $0x304] ss:$8 sps:$4 sm:$0xff]   ;;  %v74_v44 = vpack.c.bf16 %v67_v42, %v67_v42  ;;  %v2842_v45 = vld [vmem:[%s4108_s2 + $0x300] ss:$8 sps:$4 sm:$0xff]   ;;  %v862_v50 = vld [vmem:[%s4110_s4 + $0x78] sm:$0xff]  ;;  %2569 = vmatprep.subr.mxu1 %v878_v49  ;;  %vm3059_vm1 = vmmov 0  }
  0x74   :  { %v861_v52 = vld [vmem:[%s4110_s4 + $0x70] sm:$0xff]  ;;  %2570 = vmatpush3.msra.mxu1 %v862_v50  ;;  %v876_v53 = vld [vmem:[%s4110_s4 + $0xe8] sm:$0xff]  ;;  %v875_v55 = vld [vmem:[%s4110_s4 + $0xe0] sm:$0xff]  ;;  %v3568_v20 = vsub.s32 0, %v3565_v19  ;;  %v3574_v22 = vsub.s32 1, %v3565_v19  ;;  %vm972_vm2 = vcmask 523264  }
  0x75   :  { %788 = vmatpush2.bf16.msra.mxu0 %v2830_v35  ;;  %2571 = vmatprep.subr.mxu1 %v877_v51  ;;  %v860_v54 = vld [vmem:[%s4110_s4 + $0x68] sm:$0xff]  ;;  %v859_v56 = vld [vmem:[%s4110_s4 + $0x60] sm:$0xff]  ;;  %v874_v57 = vld [vmem:[%s4110_s4 + $0xd8] sm:$0xff]  ;;  %vm1182_vm3 = vcmask 1041408   ;;  %s4128_s21 = sld [smem:[#allocation6_spill]]  ;;  %vm1154_vm4 = vcmask 80896  }
  0x76   :  { %789 = vmatprep.subr.bf16.mxu0 %v2835_v36  ;;  %2572 = vmatpush3.msra.mxu1 %v861_v52  ;;  %v858_v58 = vld [vmem:[%s4110_s4 + $0x58] sm:$0xff]  ;;  %v873_v59 = vld [vmem:[%s4110_s4 + $0xd0] sm:$0xff]  ;;  %v872_v61 = vld [vmem:[%s4110_s4 + $0xc8] sm:$0xff]  ;;  %vm1141_vm5 = vcmp.lt.s32.totalorder %v3565_v19, 2  ;;  %vm61_vm6 = vcmask 0  }
  0x77   :  { %2573 = vmatprep.subr.mxu1 %v876_v53  ;;  %v857_v60 = vld [vmem:[%s4110_s4 + $0x50] sm:$0xff]  ;;  %v856_v62 = vld [vmem:[%s4110_s4 + $0x48] sm:$0xff]  ;;  %v871_v63 = vld [vmem:[%s4110_s4 + $0xc0] sm:$0xff]  ;;  %62 = vst.msk [vmem:[#allocation2] sm:$0x1] %vm61_vm6, %v3058_v17 }
  0x78   :  { %2574 = vmatpush3.msra.mxu1 %v860_v54  ;;  %v855_v0 = vld [vmem:[%s4110_s4 + $0x40] sm:$0xff]  ;;  %v870_v1 = vld [vmem:[%s4110_s4 + $0xb8] sm:$0xff]  ;;  %v869_v3 = vld [vmem:[%s4110_s4 + $0xb0] sm:$0xff] }
  0x79   :  { %790 = vmatpush2.bf16.msra.mxu0 %v2833_v37  ;;  %2575 = vmatprep.subr.mxu1 %v875_v55  ;;  %v854_v2 = vld [vmem:[%s4110_s4 + $0x38] sm:$0xff]  ;;  %v853_v4 = vld [vmem:[%s4110_s4 + $0x30] sm:$0xff]  ;;  %v868_v5 = vld [vmem:[%s4110_s4 + $0xa8] sm:$0xff] }
  0x7a   :  { %791 = vmatprep.subr.bf16.mxu0 %v2838_v38  ;;  %2576 = vmatpush3.msra.mxu1 %v859_v56  ;;  %v852_v6 = vld [vmem:[%s4110_s4 + $0x28] sm:$0xff]  ;;  %v867_v7 = vld [vmem:[%s4110_s4 + $0xa0] sm:$0xff]  ;;  %v866_v9 = vld [vmem:[%s4110_s4 + $0x98] sm:$0xff] }
  0x7b   :  { %2577 = vmatprep.subr.mxu1 %v874_v57  ;;  %v851_v8 = vld [vmem:[%s4110_s4 + $0x20] sm:$0xff]  ;;  %v850_v10 = vld [vmem:[%s4110_s4 + $0x18] sm:$0xff]  ;;  %v865_v11 = vld [vmem:[%s4110_s4 + $0x90] sm:$0xff] }
  0x7c   :  { %2578 = vmatpush3.msra.mxu1 %v858_v58  ;;  %v849_v12 = vld [vmem:[%s4110_s4 + $0x10] sm:$0xff]  ;;  %v864_v13 = vld [vmem:[%s4110_s4 + $0x88] sm:$0xff]  ;;  %v863_v15 = vld [vmem:[%s4110_s4 + $0x80] sm:$0xff] }
  0x7d   :  { %792 = vmatpush2.bf16.msra.mxu0 %v2836_v39  ;;  %2579 = vmatprep.subr.mxu1 %v873_v59  ;;  %v848_v14 = vld [vmem:[%s4110_s4 + $0x8] sm:$0xff]  ;;  %v847_v16 = vld [vmem:[%s4110_s4] sm:$0xff]  ;;  %v964_v51 = vld [vmem:[%s4112_s6 + $0x38] sm:$0xff] }
  0x7e   :  { %793 = vmatprep.subr.bf16.mxu0 %v2841_v40  ;;  %2580 = vmatpush3.msra.mxu1 %v857_v60  ;;  %v175_v21 = vld [vmem:[%s4109_s3] sm:$0x3]  ;;  %v963_v52 = vld [vmem:[%s4112_s6 + $0x30] sm:$0xff]  ;;  %v962_v53 = vld [vmem:[%s4112_s6 + $0x28] sm:$0xff] }
  0x7f   :  { %2581 = vmatprep.subr.mxu1 %v872_v61  ;;  %v180_v23 = vrot.slane %v175_v21, %v3568_v20  ;;  %v184_v24 = vrot.slane %v175_v21, %v3574_v22  ;;  %v961_v54 = vld [vmem:[%s4112_s6 + $0x20] sm:$0xff]  ;;  %v960_v55 = vld [vmem:[%s4112_s6 + $0x18] sm:$0xff]  ;;  %v959_v56 = vld [vmem:[%s4112_s6 + $0x10] sm:$0xff] }
  0x80   :  { %2582 = vmatpush3.msra.mxu1 %v856_v62  ;;  %v958_v57 = vld [vmem:[%s4112_s6 + $0x8] sm:$0xff]  ;;  %v957_v58 = vld [vmem:[%s4112_s6] sm:$0xff] }
  0x81   :  { %794 = vmatpush2.bf16.msra.mxu0 %v2839_v41  ;;  %2583 = vmatprep.subr.mxu1 %v871_v63  ;;  %v2439_v60 = vld [vmem:[%s4111_s5] ss:$0 sm:$0xff] }
  0x82   :  { %818 = vmatprep.subr.bf16.mxu0 %v2844_v43  ;;  %2584 = vmatpush3.msra.mxu1 %v855_v0  ;;  %v1133_v21 = vld [vmem:[%s4128_s21] sm:$0xff] }
  0x83   :  { %2585 = vmatprep.subr.mxu1 %v870_v1  ;;  %v1054_v1 = vld [vmem:[%s4114_s8 + $0x38] sm:$0xff] }
  0x84   :  { %796 = vmatmul.mubr.bf16.vlgmr.msra.gmra.mxu0 %v74_v44  ;;  %2586 = vmatpush3.msra.mxu1 %v854_v2  ;;  %v1053_v2 = vld [vmem:[%s4114_s8 + $0x30] sm:$0xff] }
  0x85   :  { %819 = vmatpush1.bf16.msra.mxu0 %v2842_v45  ;;  %836 = vmatprep.mubr.bf16.mxu0 %v3057_v46 }
  0x86   :  { %2587 = vmatprep.subr.mxu1 %v869_v3  ;;  %2685 = vmatprep.subr.mxu0 %v3058_v17  ;;  %v1052_v3 = vld [vmem:[%s4114_s8 + $0x28] sm:$0xff] }
  0x87   :  { %2588 = vmatpush3.msra.mxu1 %v853_v4  ;;  %v1051_v4 = vld [vmem:[%s4114_s8 + $0x20] sm:$0xff] }
  0x88   :  { %2589 = vmatprep.subr.mxu1 %v868_v5  ;;  %v1050_v5 = vld [vmem:[%s4114_s8 + $0x18] sm:$0xff] }
  0x89   :  { %2590 = vmatpush3.msra.mxu1 %v852_v6  ;;  %v1049_v6 = vld [vmem:[%s4114_s8 + $0x10] sm:$0xff] }
  0x8a   :  { %2591 = vmatprep.subr.mxu1 %v867_v7  ;;  %v1048_v7 = vld [vmem:[%s4114_s8 + $0x8] sm:$0xff] }
  0x8b   :  { %2592 = vmatpush3.msra.mxu1 %v851_v8  ;;  %v1047_v8 = vld [vmem:[%s4114_s8] sm:$0xff] }
  0x8c   :  { %2438 = vmatmul.mubr.msk.bf16.vlgmr.msra.gmra.mxu0 %vm677_vm0, %v76_v48  ;;  %2593 = vmatprep.subr.mxu1 %v866_v9  ;;  %v1171_v9 = vld [vmem:[%s4116_s10 + $0x8] sm:$0x3] }
  0x8d   :  { %2594 = vmatpush3.msra.mxu1 %v850_v10  ;;  %2689 = vmatprep.mubr.msk.f32.mxu0 %vm3059_vm1, %v3058_v17  ;;  %v1170_v10 = vld [vmem:[%s4116_s10] sm:$0xff]  ;;  %s3060_s10 = smov [#allocation2]  }
  0x8e   :  { %2595 = vmatprep.subr.mxu1 %v865_v11  ;;  %2686 = vmatpush3.msk.msra.mxu0 %vm1182_vm3, %v1171_v9  ;;  %v2901_v9 = vld [vmem:[%s4120_s14 + $0x314] ss:$28 sps:$4 sm:$0xff]   ;;  %s2330_s2 = sshll.u32 %s3060_s10, 4  ;;  %s2331_s2 = int_to_ptr.vmem [resolvable:$true] %s2330_s2 }
  0x8f   :  { %2596 = vmatpush3.msra.mxu1 %v849_v12  ;;  %2687 = vmatprep.subr.mxu0 %v3058_v17  ;;  %s3035_s22 = scalar_lea.vmem %s2331_s2, 16  ;;  %s3039_s23 = scalar_lea.vmem %s2331_s2, 32 }
  0x90   :  { %2597 = vmatprep.subr.mxu1 %v864_v13  ;;  %2688 = vmatpush3.msra.mxu0 %v1170_v10  ;;  %v2440_v13 = vld [vmem:[%s4113_s7] ss:$0 sm:$0xff]  ;;  %v2899_v10 = vld [vmem:[%s4120_s14 + $0x310] ss:$28 sps:$4 sm:$0xff]   ;;  %p3036_p0 = scmp.ne.s32.totalorder %s2331_s2, %s3035_s22  ;;  %p3040_p1 = scmp.lt.s32.totalorder %s2331_s2, %s2331_s2 }
  0x91   :  { %2598 = vmatpush3.msra.mxu1 %v848_v14  ;;  %v2442_v14 = vld [vmem:[%s4115_s9] ss:$0 sm:$0xff]  ;;  %p3041_p2 = scmp.lt.s32.totalorder %s3039_s23, %s3035_s22 }
  0x92   :  { %2599 = vmatprep.subr.mxu1 %v863_v15 }
  0x93   :  { %2600 = vmatpush3.msra.mxu1 %v847_v16  ;;  %p3042_p3 = por %p3041_p2, %p3040_p1 }
  0x94   :  { %2647 = vmatprep.subr.mxu1 %v3058_v17 }
  0x95   :  { %p3043_p4 = pnand %p3042_p3, %p3036_p0 }
 0x104   :  { %v715_v25 = vpop.f32.mrf.mxu0 }
 0x105   :  { %v716_v26 = vadd.f32 %v715_v25, %v180_v23  ;;  %v756_v28 = vpop.f32.mrf.mxu1 }
 0x106   :  { %v717_v27 = vpop.f32.mrf.mxu0 }
 0x107   :  { %v718_v29 = vadd.f32 %v717_v27, %v184_v24  ;;  %v757_v30 = vadd.f32 %v756_v28, %v716_v26  ;;  %v758_v32 = vpop.f32.mrf.mxu1 }
 0x108   :  { %v719_v31 = vpop.f32.mrf.mxu0 }
 0x109   :  { %v759_v33 = vadd.f32 %v758_v32, %v718_v29  ;;  %v760_v35 = vpop.f32.mrf.mxu1 }
 0x10a   :  { %v720_v34 = vpop.f32.mrf.mxu0  ;;  %v2444_v35 = vsel %vm1141_vm5, 1.0, %v3058_v17 }
 0x10b   :  { %v761_v36 = vpop.f32.mrf.mxu1 }
 0x144   :  { %v797_v37 = vpop.f32.mrf.mxu0 }
 0x145   :  { %v798_v41 = vadd.f32 %v797_v37, %v757_v30 }
 0x146   :  { %v799_v38 = vpop.f32.mrf.mxu0 }
 0x147   :  { %v800_v43 = vadd.f32 %v799_v38, %v759_v33 }
 0x148   :  { %v801_v39 = vpop.f32.mrf.mxu0 }
 0x149   :  { %v1272_v39 = vld [vmem:[%s4118_s12 + $0x78] sm:$0xff] }
 0x14a   :  { %v802_v40 = vpop.f32.mrf.mxu0  ;;  %1304 = vmatprep.subr.mxu0 %v1272_v39  ;;  %v2860_v39 = vld [vmem:[%s4120_s14 + $0x120] ss:$28 sps:$4 sm:$0xff]  }
 0x14b   :  { %v1271_v40 = vld [vmem:[%s4118_s12 + $0x70] sm:$0xff] }
 0x14c   :  { %v838_v42 = vpop.f32.mrf.mxu0 }
 0x14d   :  { %v839_v44 = vadd.f32 %v838_v42, %v798_v41  ;;  %v1270_v41 = vld [vmem:[%s4118_s12 + $0x68] sm:$0xff]  ;;  %v1269_v42 = vld [vmem:[%s4118_s12 + $0x60] sm:$0xff] }
 0x14e   :  { %v840_v45 = vpop.f32.mrf.mxu0 }
 0x14f   :  { %v841_v46 = vadd.f32 %v840_v45, %v800_v43  ;;  %v845_v49 = vmax.f32 %v839_v44, 0.0  ;;  %v1268_v43 = vld [vmem:[%s4118_s12 + $0x58] sm:$0xff]  ;;  %v1267_v44 = vld [vmem:[%s4118_s12 + $0x50] sm:$0xff]  ;;  %v1266_v45 = vld [vmem:[%s4118_s12 + $0x48] sm:$0xff] }
 0x150   :  { %v842_v47 = vpop.f32.mrf.mxu0 }
 0x151   :  { %v846_v48 = vmax.f32 %v841_v46, 0.0  ;;  %v1265_v46 = vld [vmem:[%s4118_s12 + $0x40] sm:$0xff]  ;;  %v1264_v47 = vld [vmem:[%s4118_s12 + $0x38] sm:$0xff] }
 0x152   :  { %v843_v50 = vpop.f32.mrf.mxu0 }
 0x153   :  { %950 = vmatprep.mubr.f32.mxu1 %v846_v48  ;;  %v1263_v48 = vld [vmem:[%s4118_s12 + $0x30] sm:$0xff]  ;;  %v1261_v50 = vld [vmem:[%s4118_s12 + $0x20] sm:$0xff] }
 0x154   :  { %951 = vmatmul.mubr.f32.vlgmr.msra.gmra.mxu1 %v845_v49  ;;  %v1262_v49 = vld [vmem:[%s4118_s12 + $0x28] sm:$0xff] }
 0x155   :  { %2648 = vmatpush3.msra.mxu1 %v964_v51  ;;  %2663 = vmatprep.mubr.msk.f32.mxu1 %vm3059_vm1, %v3058_v17  ;;  %v1260_v51 = vld [vmem:[%s4118_s12 + $0x18] sm:$0xff] }
 0x156   :  { %2649 = vmatprep.subr.mxu1 %v3058_v17 }
 0x157   :  { %2650 = vmatpush3.msra.mxu1 %v963_v52  ;;  %v1259_v52 = vld [vmem:[%s4118_s12 + $0x10] sm:$0xff] }
 0x158   :  { %2651 = vmatprep.subr.mxu1 %v3058_v17 }
 0x159   :  { %2652 = vmatpush3.msra.mxu1 %v962_v53  ;;  %v1258_v53 = vld [vmem:[%s4118_s12 + $0x8] sm:$0xff] }
 0x15a   :  { %2653 = vmatprep.subr.mxu1 %v3058_v17 }
 0x15b   :  { %2654 = vmatpush3.msra.mxu1 %v961_v54  ;;  %v1257_v54 = vld [vmem:[%s4118_s12] sm:$0xff] }
 0x15c   :  { %2655 = vmatprep.subr.mxu1 %v3058_v17 }
 0x15d   :  { %2656 = vmatpush3.msra.mxu1 %v960_v55  ;;  %v2845_v55 = vld [vmem:[%s4120_s14 + $0x188] ss:$28 sps:$4 sm:$0xff]  }
 0x15e   :  { %2657 = vmatprep.subr.mxu1 %v3058_v17 }
 0x15f   :  { %2658 = vmatpush3.msra.mxu1 %v959_v56  ;;  %v2847_v56 = vld [vmem:[%s4120_s14 + $0x18c] ss:$28 sps:$4 sm:$0xff]  }
 0x160   :  { %2659 = vmatprep.subr.mxu1 %v3058_v17 }
 0x161   :  { %2660 = vmatpush3.msra.mxu1 %v958_v57  ;;  %v2850_v57 = vld [vmem:[%s4120_s14 + $0x194] ss:$28 sps:$4 sm:$0xff]  }
 0x162   :  { %2661 = vmatprep.subr.mxu1 %v3058_v17 }
 0x163   :  { %2662 = vmatpush3.msra.mxu1 %v957_v58  ;;  %v2853_v58 = vld [vmem:[%s4120_s14 + $0x154] ss:$28 sps:$4 sm:$0xff]  }
 0x164   :  { %2666 = vmatprep.subr.mxu1 %v3058_v17 }
 0x214   :  { %v2601_v59 = vpop.f32.mrf.mxu1 }
 0x216   :  { %v2602_v61 = vpop.f32.mrf.mxu1 }
 0x217   :  { %v2603_v62 = vadd.f32 %v2602_v61, %v2601_v59  ;;  %v2859_v59 = vld [vmem:[%s4120_s14 + $0x11c] ss:$28 sps:$4 sm:$0xff]   ;;  %v2865_v61 = vld [vmem:[%s4120_s14 + $0xe4] ss:$28 sps:$4 sm:$0xff]  }
 0x219   :  { %v953_v63 = vadd.f32 %v2603_v62, %v2439_v60  ;;  %v2857_v60 = vld [vmem:[%s4120_s14 + $0x118] ss:$28 sps:$4 sm:$0xff]   ;;  %v2863_v62 = vld [vmem:[%s4120_s14 + $0xe0] ss:$28 sps:$4 sm:$0xff]  }
 0x21b   :  { %v956_v0 = vmax.f32 %v953_v63, 0.0  ;;  %v2871_v63 = vld [vmem:[%s4120_s14 + $0xac] ss:$28 sps:$4 sm:$0xff]  }
 0x21d   :  { %2664 = vmatmul.mubr.msk.f32.vlgmr.msra.gmra.mxu1 %vm972_vm2, %v956_v0 }
 0x21e   :  { %2667 = vmatpush3.msra.mxu1 %v1054_v1  ;;  %2682 = vmatprep.mubr.msk.f32.mxu1 %vm3059_vm1, %v3058_v17  ;;  %v2877_v1 = vld [vmem:[%s4120_s14 + $0x74] ss:$28 sps:$4 sm:$0xff]  }
 0x21f   :  { %2668 = vmatprep.subr.mxu1 %v3058_v17 }
 0x220   :  { %2669 = vmatpush3.msra.mxu1 %v1053_v2  ;;  %v2875_v2 = vld [vmem:[%s4120_s14 + $0x70] ss:$28 sps:$4 sm:$0xff]  }
 0x221   :  { %2670 = vmatprep.subr.mxu1 %v3058_v17 }
 0x222   :  { %2671 = vmatpush3.msra.mxu1 %v1052_v3  ;;  %v2883_v3 = vld [vmem:[%s4120_s14 + $0x3c] ss:$28 sps:$4 sm:$0xff]  }
 0x223   :  { %2672 = vmatprep.subr.mxu1 %v3058_v17 }
 0x224   :  { %2673 = vmatpush3.msra.mxu1 %v1051_v4  ;;  %v2881_v4 = vld [vmem:[%s4120_s14 + $0x38] ss:$28 sps:$4 sm:$0xff]  }
 0x225   :  { %2674 = vmatprep.subr.mxu1 %v3058_v17 }
 0x226   :  { %2675 = vmatpush3.msra.mxu1 %v1050_v5  ;;  %v2889_v5 = vld [vmem:[%s4120_s14 + $0x4] ss:$28 sps:$4 sm:$0xff]  }
 0x227   :  { %2676 = vmatprep.subr.mxu1 %v3058_v17 }
 0x228   :  { %2677 = vmatpush3.msra.mxu1 %v1049_v6  ;;  %v2887_v6 = vld [vmem:[%s4120_s14] ss:$28 sps:$4 sm:$0xff]  }
 0x229   :  { %2678 = vmatprep.subr.mxu1 %v3058_v17 }
 0x22a   :  { %2679 = vmatpush3.msra.mxu1 %v1048_v7  ;;  %v2895_v7 = vld [vmem:[%s4120_s14 + $0x34c] ss:$28 sps:$4 sm:$0xff]  }
 0x22b   :  { %2680 = vmatprep.subr.mxu1 %v3058_v17 }
 0x22c   :  { %2681 = vmatpush3.msra.mxu1 %v1047_v8  ;;  %v2893_v8 = vld [vmem:[%s4120_s14 + $0x348] ss:$28 sps:$4 sm:$0xff]  }
 0x22d   :  { %2683 = vmatmul.mubr.msk.f32.vlgmr.msra.gmra.mxu1 %vm972_vm2, %v956_v0  ;;  %2104 = vmatprep.subr.bf16.mxu1 %v2847_v56  ;;  %v2869_v0 = vld [vmem:[%s4120_s14 + $0xa8] ss:$28 sps:$4 sm:$0xff]   ;;  %v2902_v56 = vld [vmem:[%s4120_s14 + $0x318] ss:$28 sps:$4 sm:$0xff]  }
 0x22e   :  { %2105 = vmatpush1.bf16.msra.mxu1 %v2845_v55  ;;  %v2904_v55 = vld [vmem:[%s4120_s14 + $0x31c] ss:$28 sps:$4 sm:$0xff]  }
 0x22f   :  { %2106 = vmatprep.subr.bf16.mxu1 %v2853_v58  ;;  %v2908_v58 = vld [vmem:[%s4120_s14 + $0x2e0] ss:$28 sps:$4 sm:$0xff]  }
 0x2dd   :  { %v1042_v11 = vpop.f32.mrf.mxu1 }
 0x2de   :  { %v1043_v16 = vadd.f32 %v2440_v13, %v1042_v11  ;;  %v2907_v11 = vld [vmem:[%s4120_s14 + $0x2dc] ss:$28 sps:$4 sm:$0xff]   ;;  %v2913_v13 = vld [vmem:[%s4120_s14 + $0x2a4] ss:$28 sps:$4 sm:$0xff]  }
 0x2df   :  { %v2665_v12 = vpop.f32.mrf.mxu1 }
 0x2e0   :  { %v1046_v25 = vmax.f32 %v1043_v16, 0.0  ;;  %v2905_v12 = vld [vmem:[%s4120_s14 + $0x2d8] ss:$28 sps:$4 sm:$0xff]   ;;  %v2917_v16 = vld [vmem:[%s4120_s14 + $0x268] ss:$28 sps:$4 sm:$0xff]  }
 0x2e2   :  { %v1145_v30 = vmul.f32 %v1046_v25, %v1046_v25 }
 0x2ed   :  { %v1128_v15 = vpop.f32.mrf.mxu1 }
 0x2ee   :  { %v1129_v18 = vadd.f32 %v2442_v14, %v1128_v15  ;;  %v2911_v14 = vld [vmem:[%s4120_s14 + $0x2a0] ss:$28 sps:$4 sm:$0xff]   ;;  %v2919_v15 = vld [vmem:[%s4120_s14 + $0x26c] ss:$28 sps:$4 sm:$0xff]  }
 0x2ef   :  { %v2684_v23 = vpop.f32.mrf.mxu1 }
 0x2f0   :  { %v1132_v24 = vmax.f32 %v1129_v18, 0.0  ;;  %v2925_v18 = vld [vmem:[%s4120_s14 + $0x234] ss:$28 sps:$4 sm:$0xff]  }
 0x2f2   :  { %v1134_v26 = vmul.f32 %v1133_v21, %v1132_v24  ;;  %v1144_v27 = vmul.f32 %v1132_v24, %v1132_v24  ;;  %v2923_v21 = vld [vmem:[%s4120_s14 + $0x230] ss:$28 sps:$4 sm:$0xff]  }
 0x2f4   :  { %v1135_v28 = vadd.f32 %v1134_v26, %v1046_v25  ;;  %v1147_v29 = vadd.f32 1e-08, %v1144_v27  ;;  %v1146_v32 = vadd.f32 %v1145_v30, %v1144_v27  ;;  %v2446_v30 = vld [vmem:[%s4117_s11] ss:$0 sm:$0xff] }
 0x2f6   :  { %3005 = vlog2.f32 %v1147_v29  ;;  %2690 = vmatmul.mubr.msk.f32.vlgmr.msra.gmra.mxu0 %vm1154_vm4, %v1135_v28 }
 0x2f7   :  { %1352 = vmatprep.mubr.f32.mxu0 %v3058_v17  ;;  %1305 = vmatpush1.msra.mxu0 %v1271_v40  ;;  %v2851_v17 = vld [vmem:[%s4120_s14 + $0x150] ss:$28 sps:$4 sm:$0xff]  }
 0x2f8   :  { %1306 = vmatprep.subr.mxu0 %v1270_v41  ;;  %2107 = vmatpush1.bf16.msra.mxu1 %v2851_v17  ;;  %v2868_v40 = vld [vmem:[%s4120_s14 + $0xec] ss:$28 sps:$4 sm:$0xff]  }
 0x2f9   :  { %1307 = vmatpush1.msra.mxu0 %v1269_v42  ;;  %2108 = vmatprep.subr.bf16.mxu1 %v2859_v59  ;;  %v2866_v41 = vld [vmem:[%s4120_s14 + $0xe8] ss:$28 sps:$4 sm:$0xff]   ;;  %v2874_v42 = vld [vmem:[%s4120_s14 + $0xb4] ss:$28 sps:$4 sm:$0xff]  }
 0x2fa   :  { %1308 = vmatprep.subr.mxu0 %v1268_v43  ;;  %v2872_v43 = vld [vmem:[%s4120_s14 + $0xb0] ss:$28 sps:$4 sm:$0xff]  }
 0x2fb   :  { %1309 = vmatpush1.msra.mxu0 %v1267_v44  ;;  %v2880_v44 = vld [vmem:[%s4120_s14 + $0x7c] ss:$28 sps:$4 sm:$0xff]   ;;  %v2916_v17 = vld [vmem:[%s4120_s14 + $0x2ac] ss:$28 sps:$4 sm:$0xff]  }
 0x2fc   :  { %1310 = vmatprep.subr.mxu0 %v1266_v45  ;;  %2109 = vmatpush1.bf16.msra.mxu1 %v2857_v60  ;;  %v2878_v45 = vld [vmem:[%s4120_s14 + $0x78] ss:$28 sps:$4 sm:$0xff]  }
 0x2fd   :  { %1311 = vmatpush1.msra.mxu0 %v1265_v46  ;;  %2110 = vmatprep.subr.bf16.mxu1 %v2865_v61  ;;  %v2886_v46 = vld [vmem:[%s4120_s14 + $0x44] ss:$28 sps:$4 sm:$0xff]  }
 0x2fe   :  { %1312 = vmatprep.subr.mxu0 %v1264_v47  ;;  %v2884_v47 = vld [vmem:[%s4120_s14 + $0x40] ss:$28 sps:$4 sm:$0xff]   ;;  %v2914_v61 = vld [vmem:[%s4120_s14 + $0x2a8] ss:$28 sps:$4 sm:$0xff]  }
 0x2ff   :  { %1313 = vmatpush1.msra.mxu0 %v1263_v48  ;;  %v2892_v48 = vld [vmem:[%s4120_s14 + $0xc] ss:$28 sps:$4 sm:$0xff]  }
 0x300   :  { %1314 = vmatprep.subr.mxu0 %v1262_v49  ;;  %2111 = vmatpush1.bf16.msra.mxu1 %v2863_v62  ;;  %v2890_v49 = vld [vmem:[%s4120_s14 + $0x8] ss:$28 sps:$4 sm:$0xff]   ;;  %v2922_v62 = vld [vmem:[%s4120_s14 + $0x274] ss:$28 sps:$4 sm:$0xff]  }
 0x301   :  { %1315 = vmatpush1.msra.mxu0 %v1261_v50  ;;  %2112 = vmatprep.subr.bf16.mxu1 %v2871_v63  ;;  %v1152_v50 = vld [vmem:[#allocation2] sm:$0x1]  ;;  %v2920_v63 = vld [vmem:[%s4120_s14 + $0x270] ss:$28 sps:$4 sm:$0xff]  }
 0x302   :  { %1316 = vmatprep.subr.mxu0 %v1260_v51  ;;  %v2898_v51 = vld [vmem:[%s4120_s14 + $0x354] ss:$28 sps:$4 sm:$0xff]  }
 0x303   :  { %v3006_v31 = vpop.eup %3005  ;;  %1317 = vmatpush1.msra.mxu0 %v1259_v52 }
 0x304   :  { %v1149_v33 = vmul.f32 0.6931472, %v3006_v31  ;;  %1318 = vmatprep.subr.mxu0 %v1258_v53  ;;  %2113 = vmatpush1.bf16.msra.mxu1 %v2869_v0  ;;  %v2928_v0 = vld [vmem:[%s4120_s14 + $0x23c] ss:$28 sps:$4 sm:$0xff]  }
 0x305   :  { %1319 = vmatpush1.msra.mxu0 %v1257_v54  ;;  %2114 = vmatprep.subr.bf16.mxu1 %v2877_v1  ;;  %v2896_v54 = vld [vmem:[%s4120_s14 + $0x350] ss:$28 sps:$4 sm:$0xff]   ;;  %v2926_v1 = vld [vmem:[%s4120_s14 + $0x238] ss:$28 sps:$4 sm:$0xff]  }
 0x306   :  { %v1150_v34 = vsub.f32 %v1146_v32, %v1149_v33  ;;  %2145 = vmatprep.subr.bf16.mxu0 %v2850_v57  ;;  %v2910_v57 = vld [vmem:[%s4120_s14 + $0x2e4] ss:$28 sps:$4 sm:$0xff]  }
 0x308   :  { %v2445_v36 = vadd.f32 -1.0, %v1150_v34  ;;  %2115 = vmatpush1.bf16.msra.mxu1 %v2875_v2  ;;  %v2848_v34 = vld [vmem:[%s4120_s14 + $0x190] ss:$28 sps:$4 sm:$0xff]   ;;  %v2931_v2 = vld [vmem:[%s4120_s14 + $0x1fc] ss:$28 sps:$4 sm:$0xff]  }
 0x309   :  { %2116 = vmatprep.subr.bf16.mxu1 %v2883_v3  ;;  %v2934_v3 = vld [vmem:[%s4120_s14 + $0x204] ss:$28 sps:$4 sm:$0xff]  }
 0x30a   :  { %v1153_v37 = vmul.f32 %v2445_v36, %v2444_v35  ;;  %v2856_v36 = vld [vmem:[%s4120_s14 + $0x15c] ss:$28 sps:$4 sm:$0xff]  }
 0x30c   :  { %v1155_v38 = vsel %vm1154_vm4, %v1153_v37, 0.0  ;;  %2117 = vmatpush1.bf16.msra.mxu1 %v2881_v4  ;;  %v2854_v37 = vld [vmem:[%s4120_s14 + $0x158] ss:$28 sps:$4 sm:$0xff]  }
 0x30d   :  { %1156 = vadd.xlane.f32.xlu0 %v1155_v38  ;;  %2118 = vmatprep.subr.bf16.mxu1 %v2889_v5  ;;  %v2862_v38 = vld [vmem:[%s4120_s14 + $0x124] ss:$28 sps:$4 sm:$0xff]   ;;  %v2929_v4 = vld [vmem:[%s4120_s14 + $0x1f8] ss:$28 sps:$4 sm:$0xff]  }
 0x30e   :  { %v2932_v5 = vld [vmem:[%s4120_s14 + $0x200] ss:$28 sps:$4 sm:$0xff]  }
 0x310   :  { %2119 = vmatpush1.bf16.msra.mxu1 %v2887_v6  ;;  %v2937_v6 = vld [vmem:[%s4120_s14 + $0x1c4] ss:$28 sps:$4 sm:$0xff]  }
 0x311   :  { %2120 = vmatprep.subr.bf16.mxu1 %v2895_v7  ;;  %v2940_v7 = vld [vmem:[%s4120_s14 + $0x1cc] ss:$28 sps:$4 sm:$0xff]  }
 0x314   :  { %2121 = vmatpush2.bf16.msra.mxu1 %v2893_v8  ;;  %v2935_v8 = vld [vmem:[%s4120_s14 + $0x1c0] ss:$28 sps:$4 sm:$0xff]  }
 0x315   :  { %2122 = vmatprep.subr.bf16.mxu1 %v2901_v9  ;;  %v2938_v9 = vld [vmem:[%s4120_s14 + $0x1c8] ss:$28 sps:$4 sm:$0xff]  }
 0x318   :  { %2123 = vmatpush2.bf16.msra.mxu1 %v2899_v10  ;;  %v2943_v10 = vld [vmem:[%s4120_s14 + $0x19c] ss:$28 sps:$4 sm:$0xff]  }
 0x319   :  { %2124 = vmatprep.subr.bf16.mxu1 %v2907_v11  ;;  %v2944_v11 = vld [vmem:[%s4120_s14 + $0x360] ss:$28 sps:$4 sm:$0xff]  }
 0x31c   :  { %2125 = vmatpush2.bf16.msra.mxu1 %v2905_v12  ;;  %v1273_v12 = vld [vmem:[%s4119_s13] sm:$0x3] }
 0x31d   :  { %2126 = vmatprep.subr.bf16.mxu1 %v2913_v13  ;;  %v1278_v13 = vrot.slane %v1273_v12, %v3568_v20 }
 0x320   :  { %2127 = vmatpush2.bf16.msra.mxu1 %v2911_v14  ;;  %v1282_v14 = vrot.slane %v1273_v12, %v3574_v22 }
 0x321   :  { %2128 = vmatprep.subr.bf16.mxu1 %v2919_v15 }
 0x324   :  { %2129 = vmatpush2.bf16.msra.mxu1 %v2917_v16 }
 0x325   :  { %2130 = vmatprep.subr.bf16.mxu1 %v2925_v18 }
 0x328   :  { %2131 = vmatpush2.bf16.msra.mxu1 %v2923_v21 }
 0x329   :  { %2132 = vmatprep.subr.bf16.mxu1 %v2931_v2  ;;  %v2998_v2 = vld [vmem:[%s4120_s14 + $0x244] ss:$28 sps:$4 sm:$0xff]  }
 0x32c   :  { %2133 = vmatpush2.bf16.msra.mxu1 %v2929_v4  ;;  %v3001_v4 = vld [vmem:[%s4120_s14 + $0x20c] ss:$28 sps:$4 sm:$0xff]  }
 0x32d   :  { %2134 = vmatprep.subr.bf16.mxu1 %v2937_v6  ;;  %v3004_v6 = vld [vmem:[%s4120_s14 + $0x1d4] ss:$28 sps:$4 sm:$0xff]  }
 0x330   :  { %2135 = vmatpush2.bf16.msra.mxu1 %v2935_v8 }
 0x331   :  { %2186 = vmatprep.subr.bf16.mxu1 %v2943_v10 }
 0x396   :  { %v1157_v23 = vpop.xlane.xlu0 %1156 }
 0x397   :  { %v1158_v24 = vrot.slane %v1157_v23, 4 }
 0x399   :  { %v1159_v25 = vadd.f32 %v1158_v24, %v1157_v23 }
 0x39b   :  { %v1160_v26 = vrot.slane %v1159_v25, 2 }
 0x39d   :  { %v1161_v27 = vadd.f32 %v1160_v26, %v1159_v25  ;;  %v2941_v26 = vld [vmem:[%s4120_s14 + $0x198] ss:$28 sps:$4 sm:$0xff]  }
 0x39f   :  { %v1162_v28 = vrot.slane %v1161_v27, 1 }
 0x3a1   :  { %v1163_v29 = vadd.f32 %v1162_v28, %v1161_v27  ;;  %v2945_v27 = vld [vmem:[%s4120_s14 + $0x1a0] ss:$28 sps:$4 sm:$0xff]  }
 0x3a3   :  { %2692 = vpush %v1163_v29  ;;  %v2948_v29 = vld [vmem:[%s4120_s14 + $0x164] ss:$28 sps:$4 sm:$0xff]  }
 0x3b6   :  { %v1252_v31 = vpop.f32.mrf.mxu0 }
 0x3b7   :  { %v1253_v32 = vadd.f32 %v2446_v30, %v1252_v31  ;;  %v2949_v30 = vld [vmem:[%s4120_s14 + $0x328] ss:$28 sps:$4 sm:$0xff]   ;;  %v2946_v31 = vld [vmem:[%s4120_s14 + $0x160] ss:$28 sps:$4 sm:$0xff]  }
 0x3b8   :  { %v2691_v33 = vpop.f32.mrf.mxu0 }
 0x3b9   :  { %v1256_v35 = vmax.f32 %v1253_v32, 0.0  ;;  %v2950_v32 = vld [vmem:[%s4120_s14 + $0x168] ss:$28 sps:$4 sm:$0xff]  }
 0x3ba   :  { %v2953_v33 = vld [vmem:[%s4120_s14 + $0x12c] ss:$28 sps:$4 sm:$0xff]  }
 0x3bb   :  { %2449 = vmatmul.mubr.msk.f32.vlgmr.msra.gmra.mxu0 %vm972_vm2, %v1256_v35  ;;  %v2951_v35 = vld [vmem:[%s4120_s14 + $0x128] ss:$28 sps:$4 sm:$0xff]  }
 0x3bc   :  { %2146 = vmatpush1.bf16.msra.mxu0 %v2848_v34  ;;  %v2954_v34 = vld [vmem:[%s4120_s14 + $0x2f0] ss:$28 sps:$4 sm:$0xff]  }
 0x3bd   :  { %2147 = vmatprep.subr.bf16.mxu0 %v2856_v36  ;;  %v2955_v36 = vld [vmem:[%s4120_s14 + $0x130] ss:$28 sps:$4 sm:$0xff]  }
 0x3c0   :  { %2148 = vmatpush1.bf16.msra.mxu0 %v2854_v37  ;;  %v2958_v37 = vld [vmem:[%s4120_s14 + $0xf4] ss:$28 sps:$4 sm:$0xff]  }
 0x3c1   :  { %2149 = vmatprep.subr.bf16.mxu0 %v2862_v38  ;;  %v2959_v38 = vld [vmem:[%s4120_s14 + $0x2b8] ss:$28 sps:$4 sm:$0xff]  }
 0x3c4   :  { %2150 = vmatpush1.bf16.msra.mxu0 %v2860_v39  ;;  %v2956_v39 = vld [vmem:[%s4120_s14 + $0xf0] ss:$28 sps:$4 sm:$0xff]  }
 0x3c5   :  { %2151 = vmatprep.subr.bf16.mxu0 %v2868_v40  ;;  %v2960_v40 = vld [vmem:[%s4120_s14 + $0xf8] ss:$28 sps:$4 sm:$0xff]  }
 0x3c8   :  { %2152 = vmatpush1.bf16.msra.mxu0 %v2866_v41  ;;  %v2963_v41 = vld [vmem:[%s4120_s14 + $0xbc] ss:$28 sps:$4 sm:$0xff]  }
 0x3c9   :  { %2153 = vmatprep.subr.bf16.mxu0 %v2874_v42  ;;  %v2964_v42 = vld [vmem:[%s4120_s14 + $0x280] ss:$28 sps:$4 sm:$0xff]  }
 0x3cc   :  { %2154 = vmatpush1.bf16.msra.mxu0 %v2872_v43  ;;  %v2961_v43 = vld [vmem:[%s4120_s14 + $0xb8] ss:$28 sps:$4 sm:$0xff]  }
 0x3cd   :  { %2155 = vmatprep.subr.bf16.mxu0 %v2880_v44  ;;  %v2965_v44 = vld [vmem:[%s4120_s14 + $0xc0] ss:$28 sps:$4 sm:$0xff]  }
 0x3d0   :  { %2156 = vmatpush1.bf16.msra.mxu0 %v2878_v45  ;;  %v2968_v45 = vld [vmem:[%s4120_s14 + $0x84] ss:$28 sps:$4 sm:$0xff]  }
 0x3d1   :  { %2157 = vmatprep.subr.bf16.mxu0 %v2886_v46  ;;  %v2969_v46 = vld [vmem:[%s4120_s14 + $0x248] ss:$28 sps:$4 sm:$0xff]  }
 0x3d4   :  { %s2693_s6 = spop %2692  ;;  %2158 = vmatpush1.bf16.msra.mxu0 %v2884_v47  ;;  %v2966_v47 = vld [vmem:[%s4120_s14 + $0x80] ss:$28 sps:$4 sm:$0xff]  }
 0x3d5   :  { %s1165_s5 = smul.f32 0.5, %s2693_s6  ;;  %2159 = vmatprep.subr.bf16.mxu0 %v2892_v48  ;;  %v2970_v48 = vld [vmem:[%s4120_s14 + $0x88] ss:$28 sps:$4 sm:$0xff]  }
 0x3d7   :  { %v1166_v52 = vstv %s1165_s5 }
 0x3d8   :  { %v1167_v53 = vadd.f32 %v1166_v52, %v1152_v50  ;;  %2160 = vmatpush1.bf16.msra.mxu0 %v2890_v49  ;;  %v2973_v49 = vld [vmem:[%s4120_s14 + $0x4c] ss:$28 sps:$4 sm:$0xff]  }
 0x3d9   :  { %2161 = vmatprep.subr.bf16.mxu0 %v2898_v51  ;;  %v2974_v50 = vld [vmem:[%s4120_s14 + $0x210] ss:$28 sps:$4 sm:$0xff]   ;;  %v2971_v51 = vld [vmem:[%s4120_s14 + $0x48] ss:$28 sps:$4 sm:$0xff]  }
 0x3da   :  { %1169 = vst.msk [vmem:[#allocation2] sm:$0x1] %vm61_vm6, %v1167_v53  ;;  %v2975_v52 = vld [vmem:[%s4120_s14 + $0x50] ss:$28 sps:$4 sm:$0xff]  }
 0x3db   :  { %v2978_v53 = vld [vmem:[%s4120_s14 + $0x14] ss:$28 sps:$4 sm:$0xff]  }
 0x3dc   :  { %2162 = vmatpush2.bf16.msra.mxu0 %v2896_v54  ;;  %v2979_v54 = vld [vmem:[%s4120_s14 + $0x1d8] ss:$28 sps:$4 sm:$0xff]  }
 0x3dd   :  { %2163 = vmatprep.subr.bf16.mxu0 %v2904_v55  ;;  %v2976_v55 = vld [vmem:[%s4120_s14 + $0x10] ss:$28 sps:$4 sm:$0xff]  }
 0x3e0   :  { %2164 = vmatpush2.bf16.msra.mxu0 %v2902_v56  ;;  %v2980_v56 = vld [vmem:[%s4120_s14 + $0x18] ss:$28 sps:$4 sm:$0xff]  }
 0x3e1   :  { %2165 = vmatprep.subr.bf16.mxu0 %v2910_v57  ;;  %v2319_v59 = vld [vmem:[#allocation2] sm:$0x1]  ;;  %v2983_v57 = vld [vmem:[%s4120_s14 + $0x35c] ss:$28 sps:$4 sm:$0xff]  }
 0x3e2   :  { %v2320_v60 = vmul.f32 0.0006377551, %v2319_v59  ;;  %v2984_v59 = vld [vmem:[%s4120_s14 + $0x320] ss:$28 sps:$4 sm:$0xff]  }
 0x3e4   :  { %2166 = vmatpush2.bf16.msra.mxu0 %v2908_v58  ;;  %2321 = vst.msk [vmem:[#allocation2] sm:$0x1] %vm61_vm6, %v2320_v60  ;;  %v2981_v58 = vld [vmem:[%s4120_s14 + $0x358] ss:$28 sps:$4 sm:$0xff]   ;;  %v2989_v60 = vld [vmem:[%s4120_s14 + $0x2ec] ss:$28 sps:$4 sm:$0xff]  }
 0x3e5   :  { %2167 = vmatprep.subr.bf16.mxu0 %v2916_v17  ;;  %v2986_v17 = vld [vmem:[%s4120_s14 + $0x324] ss:$28 sps:$4 sm:$0xff]  }
 0x3e8   :  { %2168 = vmatpush2.bf16.msra.mxu0 %v2914_v61  ;;  %v2987_v61 = vld [vmem:[%s4120_s14 + $0x2e8] ss:$28 sps:$4 sm:$0xff]  }
 0x3e9   :  { %2169 = vmatprep.subr.bf16.mxu0 %v2922_v62  ;;  %v2992_v62 = vld [vmem:[%s4120_s14 + $0x2b4] ss:$28 sps:$4 sm:$0xff]  }
 0x3ec   :  { %2170 = vmatpush2.bf16.msra.mxu0 %v2920_v63  ;;  %v2990_v63 = vld [vmem:[%s4120_s14 + $0x2b0] ss:$28 sps:$4 sm:$0xff]  }
 0x3ed   :  { %2171 = vmatprep.subr.bf16.mxu0 %v2928_v0  ;;  %v2995_v0 = vld [vmem:[%s4120_s14 + $0x27c] ss:$28 sps:$4 sm:$0xff]  }
 0x3f0   :  { %2172 = vmatpush2.bf16.msra.mxu0 %v2926_v1  ;;  %v2993_v1 = vld [vmem:[%s4120_s14 + $0x278] ss:$28 sps:$4 sm:$0xff]  }
 0x3f1   :  { %2173 = vmatprep.subr.bf16.mxu0 %v2934_v3  ;;  %v2996_v3 = vld [vmem:[%s4120_s14 + $0x240] ss:$28 sps:$4 sm:$0xff]  }
 0x3f4   :  { %2174 = vmatpush2.bf16.msra.mxu0 %v2932_v5  ;;  %v2999_v5 = vld [vmem:[%s4120_s14 + $0x208] ss:$28 sps:$4 sm:$0xff]  }
 0x3f5   :  { %2175 = vmatprep.subr.bf16.mxu0 %v2940_v7  ;;  %v3002_v7 = vld [vmem:[%s4120_s14 + $0x1d0] ss:$28 sps:$4 sm:$0xff]  }
 0x3f8   :  { %2176 = vmatpush2.bf16.msra.mxu0 %v2938_v9 }
 0x3f9   :  { %2625 = vmatprep.subr.bf16.mxu0 %v2944_v11 }
 0x47b   :  { %v1354_v15 = vpop.f32.mrf.mxu0 }
 0x47c   :  { %v1355_v16 = vadd.f32 %v1354_v15, %v1278_v13 }
 0x47d   :  { %v1356_v18 = vpop.f32.mrf.mxu0 }
 0x47e   :  { %v1357_v21 = vadd.f32 %v1356_v18, %v1282_v14  ;;  %v1359_v23 = vmax.f32 %v1355_v16, 0.0 }
 0x480   :  { %v1360_v24 = vmax.f32 %v1357_v21, 0.0  ;;  %v3933_v28 = vpack.c.bf16 %v1359_v23, %v1359_v23 }
 0x482   :  { %v1362_v25 = vpack.c.bf16 %v1360_v24, %v1360_v24 }
 0x484   :  { %2136 = vmatprep.mubr.bf16.mxu1 %v1362_v25  ;;  %2177 = vmatprep.mubr.bf16.mxu0 %v1362_v25 }
 0x485   :  { %2137 = vmatmul.mubr.bf16.vlgmr.msra.gmra.mxu1 %v3933_v28  ;;  %2178 = vmatmul.mubr.bf16.vlgmr.msra.gmra.mxu0 %v3933_v28 }
 0x486   :  { %2187 = vmatpush1.bf16.msra.mxu1 %v2941_v26  ;;  %2626 = vmatpush3.bf16.msra.mxu0 %v2945_v27 }
 0x487   :  { %2218 = vmatprep.mubr.bf16.mxu1 %v1362_v25  ;;  %2259 = vmatprep.mubr.bf16.mxu0 %v1362_v25 }
 0x488   :  { %2188 = vmatprep.subr.bf16.mxu1 %v2948_v29  ;;  %2627 = vmatprep.subr.bf16.mxu0 %v2949_v30 }
 0x48a   :  { %2189 = vmatpush1.bf16.msra.mxu1 %v2946_v31  ;;  %2628 = vmatpush3.bf16.msra.mxu0 %v2950_v32 }
 0x48b   :  { %2190 = vmatprep.subr.bf16.mxu1 %v2953_v33  ;;  %2629 = vmatprep.subr.bf16.mxu0 %v2954_v34 }
 0x48e   :  { %2191 = vmatpush1.bf16.msra.mxu1 %v2951_v35  ;;  %2630 = vmatpush3.bf16.msra.mxu0 %v2955_v36 }
 0x48f   :  { %2192 = vmatprep.subr.bf16.mxu1 %v2958_v37  ;;  %2631 = vmatprep.subr.bf16.mxu0 %v2959_v38 }
 0x492   :  { %2193 = vmatpush1.bf16.msra.mxu1 %v2956_v39  ;;  %2632 = vmatpush3.bf16.msra.mxu0 %v2960_v40 }
 0x493   :  { %2194 = vmatprep.subr.bf16.mxu1 %v2963_v41  ;;  %2633 = vmatprep.subr.bf16.mxu0 %v2964_v42 }
 0x496   :  { %2195 = vmatpush1.bf16.msra.mxu1 %v2961_v43  ;;  %2634 = vmatpush3.bf16.msra.mxu0 %v2965_v44 }
 0x497   :  { %2196 = vmatprep.subr.bf16.mxu1 %v2968_v45  ;;  %2635 = vmatprep.subr.bf16.mxu0 %v2969_v46 }
 0x49a   :  { %2197 = vmatpush1.bf16.msra.mxu1 %v2966_v47  ;;  %2636 = vmatpush3.bf16.msra.mxu0 %v2970_v48 }
 0x49b   :  { %2198 = vmatprep.subr.bf16.mxu1 %v2973_v49  ;;  %2637 = vmatprep.subr.bf16.mxu0 %v2974_v50 }
 0x49e   :  { %2199 = vmatpush1.bf16.msra.mxu1 %v2971_v51  ;;  %2638 = vmatpush3.bf16.msra.mxu0 %v2975_v52 }
 0x49f   :  { %2200 = vmatprep.subr.bf16.mxu1 %v2978_v53  ;;  %2639 = vmatprep.subr.bf16.mxu0 %v2979_v54 }
 0x4a2   :  { %2201 = vmatpush1.bf16.msra.mxu1 %v2976_v55  ;;  %2640 = vmatpush3.bf16.msra.mxu0 %v2980_v56 }
 0x4a3   :  { %2202 = vmatprep.subr.bf16.mxu1 %v2983_v57 }
 0x4a5   :  { %2260 = vmatmul.mubr.bf16.vlgmr.msra.gmra.mxu0 %v3933_v28 }
 0x4a6   :  { %2203 = vmatpush2.bf16.msra.mxu1 %v2981_v58 }
 0x4a7   :  { %2204 = vmatprep.subr.bf16.mxu1 %v2986_v17 }
 0x4aa   :  { %2205 = vmatpush2.bf16.msra.mxu1 %v2984_v59 }
 0x4ab   :  { %2206 = vmatprep.subr.bf16.mxu1 %v2989_v60 }
 0x4ae   :  { %2207 = vmatpush2.bf16.msra.mxu1 %v2987_v61 }
 0x4af   :  { %2208 = vmatprep.subr.bf16.mxu1 %v2992_v62 }
 0x4b2   :  { %2209 = vmatpush2.bf16.msra.mxu1 %v2990_v63 }
 0x4b3   :  { %2210 = vmatprep.subr.bf16.mxu1 %v2995_v0 }
 0x4b6   :  { %2211 = vmatpush2.bf16.msra.mxu1 %v2993_v1 }
 0x4b7   :  { %2212 = vmatprep.subr.bf16.mxu1 %v2998_v2 }
 0x4ba   :  { %2213 = vmatpush2.bf16.msra.mxu1 %v2996_v3 }
 0x4bb   :  { %2214 = vmatprep.subr.bf16.mxu1 %v3001_v4 }
 0x4be   :  { %2215 = vmatpush2.bf16.msra.mxu1 %v2999_v5 }
 0x4bf   :  { %2216 = vmatprep.subr.bf16.mxu1 %v3004_v6 }
 0x4c2   :  { %2217 = vmatpush2.bf16.msra.mxu1 %v3002_v7 }
 0x4c5   :  { %2219 = vmatmul.mubr.bf16.vlgmr.msra.gmra.mxu1 %v3933_v28 }
 0x4c6   :  { %3046 = shalt.err (!%p3043_p4)
}
 0x4c7   :  { %2333 = dma.vmem_to_hbm [thread:$0]  %s2331_s2, 16, %s4123_s17, [#allocation3]   ;;  %v1503_v8 = vsub.s32 2, %v3565_v19  ;;  %v1491_v9 = vld [vmem:[%s4121_s15] sm:$0x7f]  ;;  %v1507_v10 = vsub.s32 3, %v3565_v19 }
 0x4c8   :  { %v1496_v11 = vrot.slane %v1491_v9, %v3568_v20  ;;  %v1500_v13 = vrot.slane %v1491_v9, %v3574_v22  ;;  %v1519_v41 = vsub.s32 6, %v3565_v19  ;;  %v1511_v56 = vsub.s32 4, %v3565_v19 }
 0x4c9   :  { %v1504_v12 = vrot.slane %v1491_v9, %v1503_v8  ;;  %v1508_v14 = vrot.slane %v1491_v9, %v1507_v10  ;;  %v1515_v57 = vsub.s32 5, %v3565_v19 }
 0x4ca   :  { %v1520_v43 = vrot.slane %v1491_v9, %v1519_v41  ;;  %v1512_v58 = vrot.slane %v1491_v9, %v1511_v56 }
 0x4cb   :  { %v1516_v17 = vrot.slane %v1491_v9, %v1515_v57 }
 0x545   :  { %v2138_v15 = vpop.f32.mrf.mxu1  ;;  %v2179_v16 = vpop.f32.mrf.mxu0 }
 0x546   :  { %v2139_v18 = vadd.f32 %v2138_v15, %v1496_v11  ;;  %v2180_v21 = vadd.f32 %v2179_v16, %v1504_v12 }
 0x547   :  { %v2140_v23 = vpop.f32.mrf.mxu1  ;;  %v2181_v24 = vpop.f32.mrf.mxu0 }
 0x548   :  { %v2562_v25 = vmul.f32 -1.442695, %v2139_v18  ;;  %v2564_v26 = vmul.f32 -1.442695, %v2180_v21  ;;  %v2141_v27 = vadd.f32 %v2140_v23, %v1500_v13  ;;  %v2182_v28 = vadd.f32 %v2181_v24, %v1508_v14 }
 0x549   :  { %v2142_v29 = vpop.f32.mrf.mxu1  ;;  %v2183_v30 = vpop.f32.mrf.mxu0 }
 0x54a   :  { %3007 = vpow2.f32 %v2562_v25  ;;  %v2563_v31 = vmul.f32 -1.442695, %v2141_v27  ;;  %v2565_v32 = vmul.f32 -1.442695, %v2182_v28 }
 0x54b   :  { %3009 = vpow2.f32 %v2564_v26  ;;  %v2143_v20 = vpop.f32.mrf.mxu1  ;;  %v2184_v33 = vpop.f32.mrf.mxu0 }
 0x54c   :  { %3011 = vpow2.f32 %v2563_v31 }
 0x54d   :  { %3013 = vpow2.f32 %v2565_v32 }
 0x557   :  { %v3008_v22 = vpop.eup %3007 }
 0x558   :  { %v3010_v34 = vpop.eup %3009  ;;  %v2288_v35 = vadd.f32 1.0, %v3008_v22 }
 0x559   :  { %v3012_v36 = vpop.eup %3011  ;;  %v2290_v37 = vadd.f32 1.0, %v3010_v34 }
 0x55a   :  { %v3014_v38 = vpop.eup %3013  ;;  %3015 = vrcp.f32 %v2288_v35  ;;  %v2289_v39 = vadd.f32 1.0, %v3012_v36 }
 0x55b   :  { %3017 = vrcp.f32 %v2290_v37  ;;  %v2291_v40 = vadd.f32 1.0, %v3014_v38 }
 0x55c   :  { %3019 = vrcp.f32 %v2289_v39 }
 0x55d   :  { %3021 = vrcp.f32 %v2291_v40 }
 0x565   :  { %v2641_v42 = vpop.f32.mrf.mxu0 }
 0x567   :  { %v3016_v44 = vpop.eup %3015  ;;  %v2642_v45 = vpop.f32.mrf.mxu0 }
 0x568   :  { %v3018_v46 = vpop.eup %3017  ;;  %2309 = vst [vmem:[%s4122_s16] sm:$0xff] %v3016_v44  ;;  %v2643_v47 = vadd.f32 %v2642_v45, %v2641_v42 }
 0x569   :  { %v3020_v48 = vpop.eup %3019  ;;  %2311 = vst [vmem:[%s4122_s16 + $0x10] sm:$0xff] %v3018_v46  ;;  %v2644_v49 = vpop.f32.mrf.mxu0 }
 0x56a   :  { %v3022_v50 = vpop.eup %3021  ;;  %2310 = vst [vmem:[%s4122_s16 + $0x8] sm:$0xff] %v3020_v48  ;;  %v2262_v51 = vadd.f32 %v2643_v47, %v1520_v43 }
 0x56b   :  { %2312 = vst [vmem:[%s4122_s16 + $0x18] sm:$0xff] %v3022_v50  ;;  %v2645_v52 = vpop.f32.mrf.mxu0 }
 0x56c   :  { %v2568_v53 = vmul.f32 -1.442695, %v2262_v51 }
 0x56e   :  { %3023 = vpow2.f32 %v2568_v53 }
 0x57b   :  { %v3024_v54 = vpop.eup %3023 }
 0x57c   :  { %v2294_v55 = vadd.f32 1.0, %v3024_v54 }
 0x57e   :  { %3025 = vrcp.f32 %v2294_v55 }
 0x585   :  { %v2220_v59 = vpop.f32.mrf.mxu1 }
 0x586   :  { %v2221_v60 = vadd.f32 %v2220_v59, %v1512_v58 }
 0x587   :  { %v2222_v61 = vpop.f32.mrf.mxu1 }
 0x588   :  { %v2566_v62 = vmul.f32 -1.442695, %v2221_v60  ;;  %v2223_v63 = vadd.f32 %v2222_v61, %v1516_v17 }
 0x589   :  { %v2224_v0 = vpop.f32.mrf.mxu1 }
 0x58a   :  { %3027 = vpow2.f32 %v2566_v62  ;;  %v2567_v1 = vmul.f32 -1.442695, %v2223_v63 }
 0x58b   :  { %v3026_v2 = vpop.eup %3025  ;;  %v2225_v3 = vpop.f32.mrf.mxu1 }
 0x58c   :  { %2315 = vst.msk [vmem:[%s4122_s16 + $0x30] sm:$0xff] %vm677_vm0, %v3026_v2  ;;  %3029 = vpow2.f32 %v2567_v1 }
 0x597   :  { %v3028_v4 = vpop.eup %3027 }
 0x598   :  { %v2292_v19 = vadd.f32 1.0, %v3028_v4 }
 0x599   :  { %v3030_v5 = vpop.eup %3029 }
 0x59a   :  { %3031 = vrcp.f32 %v2292_v19  ;;  %v2293_v6 = vadd.f32 1.0, %v3030_v5 }
 0x59c   :  { %3033 = vrcp.f32 %v2293_v6 }
 0x5a7   :  { %v3032_v7 = vpop.eup %3031 }
 0x5a8   :  { %2313 = vst [vmem:[%s4122_s16 + $0x20] sm:$0xff] %v3032_v7 }
 0x5a9   :  { %v3034_v8 = vpop.eup %3033 }
 0x5aa   :  { %2314 = vst [vmem:[%s4122_s16 + $0x28] sm:$0xff] %v3034_v8 }
 0x5ab   :  { %3055 = dma.done.wait [#allocation3], 16  }
 0x5ac   :  { %3056 = vsyncadd [#allocation3], 4294967280 }
 0x5ad   :  { %2339 = vsyncpa [#allocation3], 1 }

</bundles_post_ra>
